<compile_context>
chip_gen: v6e
topology: v6e:2x2x1
jax: 0.10.0
libtpu: 0.0.40
codegen_flags: <defaults>
</compile_context>

<pallas_src>
from functools import partial

import jax
import jax.numpy as jnp
import numpy as np
from jax import lax
from jax.experimental import pallas as pl
from jax.experimental.pallas import tpu as pltpu


def mhca_kernel(q_ref, k_ref, v_ref, wq_ref, wo_ref, bo_ref, o_ref,
                q_sc, m_sc, l_sc, acc_sc, *,
                num_heads, scale, compute_dtype, n_k_valid, masked):
    """One (batch, q-tile, kv-tile) grid step: online-softmax cross attention."""
    f32 = jnp.float32
    cd = compute_dtype
    approx = jnp.dtype(cd) != jnp.dtype(jnp.float32)   # exact recip on pure-f32 path

    ki = pl.program_id(2)
    nk_steps = pl.num_programs(2)

    tq, C = acc_sc.shape
    tk = k_ref.shape[1]
    hd = C // num_heads
    dn = (((1,), (1,)), ((), ()))   # contract last dims: (tq,hd) x (tk,hd) -> (tq,tk)

    # ---- per-(b, q-tile) init: Q projection (scale folded in) + softmax state.
    @pl.when(ki == 0)
    def _init():
        qp = jnp.dot(q_ref[0], wq_ref[...], preferred_element_type=f32) * scale
        q_sc[...] = qp.astype(cd)
        m_sc[...] = jnp.full_like(m_sc, -jnp.inf)
        l_sc[...] = jnp.zeros_like(l_sc)
        acc_sc[...] = jnp.zeros_like(acc_sc)

    k_tile = k_ref[0]                       # (tk, C) compute dtype (cast in wrapper)
    v_tile = v_ref[0]                       # (tk, C)

    if masked:                              # static flag: only when Nk was padded
        kidx = ki * tk + lax.broadcasted_iota(jnp.int32, (1, tk), 1)
        kvalid = kidx < n_k_valid           # (1, tk)

    # Static head loop: hd is generally not lane(128)-aligned, so a fori_loop with
    # dynamic lane slices would force relayouts; with the flash tiling the per-head
    # live set is only O(tq*tk) and ends in scratch writes, so vreg pressure stays
    # bounded without unrolling concerns.
    for h in range(num_heads):
        lo = h * hd
        qh = q_sc[:, lo:lo + hd]            # (tq, hd) cd, already scaled
        kh = k_tile[:, lo:lo + hd]          # (tk, hd) cd
        vh = v_tile[:, lo:lo + hd]          # (tk, hd) cd

        s = lax.dot_general(qh, kh, dn, preferred_element_type=f32)    # (tq, tk)
        if masked:
            s = jnp.where(kvalid, s, f32(-1e30))

        m_prev = m_sc[:, h:h + 1]                                      # (tq, 1)
        m_new = jnp.maximum(m_prev, jnp.max(s, axis=-1, keepdims=True))
        alpha = jnp.exp(m_prev - m_new)                                # (tq, 1)
        p = jnp.exp(s - m_new)                                         # (tq, tk) f32

        l_sc[:, h:h + 1] = alpha * l_sc[:, h:h + 1] + jnp.sum(p, axis=-1,
                                                              keepdims=True)
        m_sc[:, h:h + 1] = m_new
        acc_sc[:, lo:lo + hd] = alpha * acc_sc[:, lo:lo + hd] + jnp.dot(
            p.astype(cd), vh, preferred_element_type=f32)

    # ---- finalize: normalize per head, then ONE full-width output projection.
    @pl.when(ki == nk_steps - 1)
    def _finalize():
        for h in range(num_heads):
            lo = h * hd
            inv = pl.reciprocal(l_sc[:, h:h + 1], approx=approx)       # (tq, 1)
            acc_sc[:, lo:lo + hd] = acc_sc[:, lo:lo + hd] * inv
        ctx = acc_sc[...].astype(cd)                                   # (tq, C)
        out = jnp.dot(ctx, wo_ref[...], preferred_element_type=f32) + bo_ref[...]
        o_ref[0] = out.astype(o_ref.dtype)


def _round_up(n, m):
    return ((n + m - 1) // m) * m


def _pick_tile(n, target, mult):
    """Tile along a sequence dim: `target` (multiple of 128, MXU-friendly) for long
    sequences, otherwise n rounded up to a sublane-friendly multiple; the wrapper
    pads the sequence to a multiple of the tile instead of using a full-length
    (VMEM-blowing) tile."""
    if n >= target:
        return target
    return _round_up(n, mult)


def _vmem_limit_bytes(tq, tk, C, num_heads, cd_bytes, out_bytes):
    """Estimate the kernel's resident VMEM set and pick a generation-safe limit."""
    tiles = 2 * (tq * C + 2 * tk * C) * cd_bytes + 2 * tq * C * out_bytes  # q,k,v,out
    weights = 2 * 2 * C * C * cd_bytes + 2 * 8 * max(C, 128) * 4           # Wq,Wo,bias
    scratch = tq * C * (cd_bytes + 4) + 2 * tq * 128 * 4                   # q_sc,acc,m,l
    est = tiles + weights + scratch
    # Stay well under v7x's 64 MiB per-TC VMEM while leaving headroom for compiler
    # temporaries; the same value is trivially safe on v5e/v6e (128 MiB physical).
    return int(min(max(2 * est, 24 << 20), max(40 << 20, est + (8 << 20))))


def multi_head_cross_attention(query, key, value, w_q, w_k, w_v, w_o, b_o,
                               num_heads, *, compute_dtype=jnp.bfloat16,
                               q_block=256, k_block=512):
    """query/key/value: [B, N, C]; w_* are PyTorch-layout [out, in]; b_o is [C]."""
    B, Nq, C = query.shape
    _, Nk, _ = key.shape
    assert C % num_heads == 0, "dim must be divisible by num_heads"
    hd = C // num_heads
    scale = hd ** -0.5
    out_dtype = query.dtype
    cd = compute_dtype
    cd_bytes = jnp.dtype(cd).itemsize
    out_bytes = jnp.dtype(out_dtype).itemsize

    # K/V projections hoisted: computed once by XLA (not once per q-tile), fed to
    # the kernel in the MXU compute dtype. Wk/Wv never enter kernel VMEM.
    k_proj = jnp.dot(key, w_k.T).astype(cd)             # (B, Nk, C)
    v_proj = jnp.dot(value, w_v.T).astype(cd)           # (B, Nk, C)

    mult = 16 if cd_bytes == 2 else 8                   # bf16 sublane packing
    tq = _pick_tile(Nq, q_block, mult)
    tk = _pick_tile(Nk, k_block, mult)
    Nq_p = _round_up(Nq, tq)
    Nk_p = _round_up(Nk, tk)
    masked = Nk_p != Nk                                 # padded keys must be masked

    q_cd = query.astype(cd)
    if Nq_p != Nq:     # padded query rows are independent garbage; sliced off below
        q_cd = jnp.pad(q_cd, ((0, 0), (0, Nq_p - Nq), (0, 0)))
    if masked:
        k_proj = jnp.pad(k_proj, ((0, 0), (0, Nk_p - Nk), (0, 0)))
        v_proj = jnp.pad(v_proj, ((0, 0), (0, Nk_p - Nk), (0, 0)))

    wq_t = w_q.T.astype(cd)
    wo_t = w_o.T.astype(cd)
    bo_2d = b_o.reshape(1, C).astype(jnp.float32)

    grid = (B, Nq_p // tq, Nk_p // tk)

    kernel = partial(mhca_kernel, num_heads=num_heads, scale=scale,
                     compute_dtype=cd, n_k_valid=Nk, masked=masked)

    out_p = pl.pallas_call(
        kernel,
        out_shape=jax.ShapeDtypeStruct((B, Nq_p, C), out_dtype),
        grid=grid,
        in_specs=[
            pl.BlockSpec((1, tq, C), lambda b, qi, ki: (b, qi, 0)),   # query tile
            pl.BlockSpec((1, tk, C), lambda b, qi, ki: (b, ki, 0)),   # projected K tile
            pl.BlockSpec((1, tk, C), lambda b, qi, ki: (b, ki, 0)),   # projected V tile
            pl.BlockSpec((C, C), lambda b, qi, ki: (0, 0)),           # Wq (resident)
            pl.BlockSpec((C, C), lambda b, qi, ki: (0, 0)),           # Wo (resident)
            pl.BlockSpec((1, C), lambda b, qi, ki: (0, 0)),           # out-proj bias
        ],
        out_specs=pl.BlockSpec((1, tq, C), lambda b, qi, ki: (b, qi, 0)),
        scratch_shapes=[
            pltpu.VMEM((tq, C), cd),                      # q_sc: scaled projected Q
            pltpu.VMEM((tq, num_heads), jnp.float32),     # m: running max per head
            pltpu.VMEM((tq, num_heads), jnp.float32),     # l: running denom per head
            pltpu.VMEM((tq, C), jnp.float32),             # acc: running context
        ],
        compiler_params=pltpu.CompilerParams(
            dimension_semantics=("parallel", "parallel", "arbitrary"),
            vmem_limit_bytes=_vmem_limit_bytes(tq, tk, C, num_heads,
                                               cd_bytes, out_bytes),
        ),
    )(q_cd, k_proj, v_proj, wq_t, wo_t, bo_2d)

    return out_p[:, :Nq, :] if Nq_p != Nq else out_p


def mhca_reference(query, key, value, w_q, w_k, w_v, w_o, b_o, num_heads):
    """Pure-JAX reference mirroring the PyTorch forward."""
    B, Nq, C = query.shape
    _, Nk, _ = key.shape
    hd = C // num_heads
    scale = hd ** -0.5
    q = query @ w_q.T
    k = key @ w_k.T
    v = value @ w_v.T
    q = q.reshape(B, Nq, num_heads, hd).transpose(0, 2, 1, 3)
    k = k.reshape(B, Nk, num_heads, hd).transpose(0, 2, 1, 3)
    v = v.reshape(B, Nk, num_heads, hd).transpose(0, 2, 1, 3)
    attn = jnp.einsum("bhqd,bhkd->bhqk", q, k) * scale
    attn = jax.nn.softmax(attn, axis=-1)
    x = jnp.einsum("bhqk,bhkd->bhqd", attn, v)
    x = x.transpose(0, 2, 1, 3).reshape(B, Nq, C)
    return x @ w_o.T + b_o


if __name__ == "__main__":
    def _run_case(B, Nq, Nk, dim, num_heads, case, **kw):
        base = jax.random.fold_in(jax.random.PRNGKey(0), case)
        keys = jax.random.split(base, 8)
        query = jax.random.normal(keys[0], (B, Nq, dim), dtype=jnp.float32)
        key_t = jax.random.normal(keys[1], (B, Nk, dim), dtype=jnp.float32)
        value = jax.random.normal(keys[2], (B, Nk, dim), dtype=jnp.float32)
        # PyTorch layout: Linear.weight is [out, in].
        w_q = 0.05 * jax.random.normal(keys[3], (dim, dim), dtype=jnp.float32)
        w_k = 0.05 * jax.random.normal(keys[4], (dim, dim), dtype=jnp.float32)
        w_v = 0.05 * jax.random.normal(keys[5], (dim, dim), dtype=jnp.float32)
        w_o = 0.05 * jax.random.normal(keys[6], (dim, dim), dtype=jnp.float32)
        b_o = 0.05 * jax.random.normal(keys[7], (dim,), dtype=jnp.float32)
        ref = mhca_reference(query, key_t, value, w_q, w_k, w_v, w_o, b_o, num_heads)
        out = multi_head_cross_attention(query, key_t, value, w_q, w_k, w_v, w_o,
                                         b_o, num_heads, **kw)
        out = jax.block_until_ready(out)
        return np.asarray(out), np.asarray(ref)

    # Small shapes consistent with the module: [batch, seq, dim].
    # 1) Full-precision path, single kv tile: tight tolerance vs the f32 reference.
    out, ref = _run_case(2, 8, 8, 32, 8, case=0, compute_dtype=jnp.float32)
    np.testing.assert_allclose(out, ref, rtol=1e-4, atol=1e-4)

    # 2) Full-precision path, multiple q/kv tiles with padding + key masking
    #    (exercises the online-softmax accumulator across kv steps).
    out, ref = _run_case(1, 24, 40, 32, 4, case=1, compute_dtype=jnp.float32,
                         q_block=16, k_block=16)
    np.testing.assert_allclose(out, ref, rtol=1e-4, atol=1e-4)

    # 3) Performance path: bf16 MXU operands, f32 accumulation (loose tolerance).
    out, ref = _run_case(2, 8, 8, 32, 8, case=0, compute_dtype=jnp.bfloat16)
    np.testing.assert_allclose(out, ref, rtol=3e-2, atol=3e-2)

    print("KERNEL_OK")
</pallas_src>

<mosaic_0001>
module attributes {stable_mosaic.version = 11 : i64} {
  func.func @mhca_kernel(%arg0: i32, %arg1: i32, %arg2: i32, %arg3: memref<1x8x32xf32, #tpu.memory_space<vmem>>, %arg4: memref<1x8x32xf32, #tpu.memory_space<vmem>>, %arg5: memref<1x8x32xf32, #tpu.memory_space<vmem>>, %arg6: memref<32x32xf32, #tpu.memory_space<vmem>>, %arg7: memref<32x32xf32, #tpu.memory_space<vmem>>, %arg8: memref<1x32xf32, #tpu.memory_space<vmem>>, %arg9: memref<1x8x32xf32, #tpu.memory_space<vmem>>, %arg10: memref<8x32xf32, #tpu.memory_space<vmem>>, %arg11: memref<8x8xf32, #tpu.memory_space<vmem>>, %arg12: memref<8x8xf32, #tpu.memory_space<vmem>>, %arg13: memref<8x32xf32, #tpu.memory_space<vmem>>) attributes {dimension_semantics = [#tpu.dimension_semantics<parallel>, #tpu.dimension_semantics<parallel>, #tpu.dimension_semantics<arbitrary>], iteration_bounds = array<i64: 2, 1, 1>, scalar_prefetch = 0 : i64, scratch_operands = 4 : i64, tpu.core_type = #tpu.core_type<tc>, window_params = [{transform_indices = @transform_0, window_bounds = array<i64: 1, 8, 32>}, {transform_indices = @transform_1, window_bounds = array<i64: 1, 8, 32>}, {transform_indices = @transform_2, window_bounds = array<i64: 1, 8, 32>}, {pipeline_mode = #tpu.pipeline_mode<synchronous>, transform_indices = @transform_3, window_bounds = array<i64: 32, 32>}, {pipeline_mode = #tpu.pipeline_mode<synchronous>, transform_indices = @transform_4, window_bounds = array<i64: 32, 32>}, {pipeline_mode = #tpu.pipeline_mode<synchronous>, transform_indices = @transform_5, window_bounds = array<i64: 1, 32>}, {transform_indices = @transform_6, window_bounds = array<i64: 1, 8, 32>}]} {
    %c0_i32 = arith.constant 0 : i32
    %0 = arith.cmpi eq, %arg2, %c0_i32 : i32
    %1 = arith.extui %0 : i1 to i32
    %c0_i32_0 = arith.constant 0 : i32
    %2 = arith.cmpi ne, %1, %c0_i32_0 : i32
    scf.if %2 {
      %c0_138 = arith.constant 0 : index
      %c0_139 = arith.constant 0 : index
      %c0_140 = arith.constant 0 : index
      %218 = vector.load %arg3[%c0_138, %c0_139, %c0_140] : memref<1x8x32xf32, #tpu.memory_space<vmem>>, vector<1x8x32xf32>
      %219 = vector.shape_cast %218 : vector<1x8x32xf32> to vector<8x32xf32>
      %c0_141 = arith.constant 0 : index
      %c0_142 = arith.constant 0 : index
      %220 = vector.load %arg6[%c0_141, %c0_142] : memref<32x32xf32, #tpu.memory_space<vmem>>, vector<32x32xf32>
      %cst_143 = arith.constant dense<0.000000e+00> : vector<8x32xf32>
      %221 = tpu.matmul %219, %220, %cst_143 {dimension_numbers = #tpu.dot_dimension_numbers<[1], [0], [0], [1], [0, 0, 1, 1], [], []>} : vector<8x32xf32>, vector<32x32xf32>, vector<8x32xf32> -> vector<8x32xf32>
      %cst_144 = arith.constant 5.000000e-01 : f32
      %222 = vector.broadcast %cst_144 : f32 to vector<8x32xf32>
      %223 = arith.mulf %221, %222 : vector<8x32xf32>
      %c0_145 = arith.constant 0 : index
      %c0_146 = arith.constant 0 : index
      %224 = vector.load %arg10[%c0_145, %c0_146] : memref<8x32xf32, #tpu.memory_space<vmem>>, vector<8x32xf32>
      tpu.vector_store %arg10[%c0_145, %c0_146], %223 {strides = array<i32>} : memref<8x32xf32, #tpu.memory_space<vmem>>, vector<8x32xf32>,
      %cst_147 = arith.constant 0xFF800000 : f32
      %225 = vector.broadcast %cst_147 : f32 to vector<8x8xf32>
      %c0_148 = arith.constant 0 : index
      %c0_149 = arith.constant 0 : index
      %226 = vector.load %arg11[%c0_148, %c0_149] : memref<8x8xf32, #tpu.memory_space<vmem>>, vector<8x8xf32>
      tpu.vector_store %arg11[%c0_148, %c0_149], %225 {strides = array<i32>} : memref<8x8xf32, #tpu.memory_space<vmem>>, vector<8x8xf32>,
      %cst_150 = arith.constant 0.000000e+00 : f32
      %227 = vector.broadcast %cst_150 : f32 to vector<8x8xf32>
      %c0_151 = arith.constant 0 : index
      %c0_152 = arith.constant 0 : index
      %228 = vector.load %arg12[%c0_151, %c0_152] : memref<8x8xf32, #tpu.memory_space<vmem>>, vector<8x8xf32>
      tpu.vector_store %arg12[%c0_151, %c0_152], %227 {strides = array<i32>} : memref<8x8xf32, #tpu.memory_space<vmem>>, vector<8x8xf32>,
      %cst_153 = arith.constant 0.000000e+00 : f32
      %229 = vector.broadcast %cst_153 : f32 to vector<8x32xf32>
      %c0_154 = arith.constant 0 : index
      %c0_155 = arith.constant 0 : index
      %230 = vector.load %arg13[%c0_154, %c0_155] : memref<8x32xf32, #tpu.memory_space<vmem>>, vector<8x32xf32>
      tpu.vector_store %arg13[%c0_154, %c0_155], %229 {strides = array<i32>} : memref<8x32xf32, #tpu.memory_space<vmem>>, vector<8x32xf32>,
    } else {
    }
    %c0 = arith.constant 0 : index
    %c0_1 = arith.constant 0 : index
    %c0_2 = arith.constant 0 : index
    %3 = vector.load %arg4[%c0, %c0_1, %c0_2] : memref<1x8x32xf32, #tpu.memory_space<vmem>>, vector<1x8x32xf32>
    %4 = vector.shape_cast %3 : vector<1x8x32xf32> to vector<8x32xf32>
    %c0_3 = arith.constant 0 : index
    %c0_4 = arith.constant 0 : index
    %c0_5 = arith.constant 0 : index
    %5 = vector.load %arg5[%c0_3, %c0_4, %c0_5] : memref<1x8x32xf32, #tpu.memory_space<vmem>>, vector<1x8x32xf32>
    %6 = vector.shape_cast %5 : vector<1x8x32xf32> to vector<8x32xf32>
    %c0_6 = arith.constant 0 : index
    %c0_7 = arith.constant 0 : index
    %7 = vector.load %arg10[%c0_6, %c0_7] : memref<8x32xf32, #tpu.memory_space<vmem>>, vector<8x4xf32>
    %8 = vector.extract_strided_slice %4 {offsets = [0, 0], sizes = [8, 4], strides = [1, 1]} : vector<8x32xf32> to vector<8x4xf32>
    %9 = vector.extract_strided_slice %6 {offsets = [0, 0], sizes = [8, 4], strides = [1, 1]} : vector<8x32xf32> to vector<8x4xf32>
    %cst = arith.constant dense<0.000000e+00> : vector<8x8xf32>
    %10 = tpu.matmul %7, %8, %cst {dimension_numbers = #tpu.dot_dimension_numbers<[1], [1], [0], [0], [0, 0, 1, 0], [], []>} : vector<8x4xf32>, vector<8x4xf32>, vector<8x8xf32> -> vector<8x8xf32>
    %c0_8 = arith.constant 0 : index
    %c0_9 = arith.constant 0 : index
    %11 = vector.load %arg11[%c0_8, %c0_9] : memref<8x8xf32, #tpu.memory_space<vmem>>, vector<8x1xf32>
    %cst_10 = arith.constant dense<0xFF800000> : vector<8xf32>
    %12 = vector.multi_reduction <maximumf>, %10, %cst_10 [1] : vector<8x8xf32> to vector<8xf32>
    %13 = vector.shape_cast %12 : vector<8xf32> to vector<8x1xf32>
    %14 = arith.maximumf %11, %13 : vector<8x1xf32>
    %15 = arith.subf %11, %14 : vector<8x1xf32>
    %16 = math.exp %15 : vector<8x1xf32>
    %17 = vector.broadcast %14 : vector<8x1xf32> to vector<8x8xf32>
    %18 = arith.subf %10, %17 : vector<8x8xf32>
    %19 = math.exp %18 : vector<8x8xf32>
    %c0_11 = arith.constant 0 : index
    %c0_12 = arith.constant 0 : index
    %20 = vector.load %arg12[%c0_11, %c0_12] : memref<8x8xf32, #tpu.memory_space<vmem>>, vector<8x1xf32>
    %21 = arith.mulf %16, %20 : vector<8x1xf32>
    %cst_13 = arith.constant dense<0.000000e+00> : vector<8xf32>
    %22 = vector.multi_reduction <add>, %19, %cst_13 [1] : vector<8x8xf32> to vector<8xf32>
    %23 = vector.shape_cast %22 : vector<8xf32> to vector<8x1xf32>
    %24 = arith.addf %21, %23 : vector<8x1xf32>
    %c0_14 = arith.constant 0 : index
    %c0_15 = arith.constant 0 : index
    %25 = vector.load %arg12[%c0_14, %c0_15] : memref<8x8xf32, #tpu.memory_space<vmem>>, vector<8x1xf32>
    tpu.vector_store %arg12[%c0_14, %c0_15], %24 {strides = array<i32>} : memref<8x8xf32, #tpu.memory_space<vmem>>, vector<8x1xf32>,
    %c0_16 = arith.constant 0 : index
    %c0_17 = arith.constant 0 : index
    %26 = vector.load %arg11[%c0_16, %c0_17] : memref<8x8xf32, #tpu.memory_space<vmem>>, vector<8x1xf32>
    tpu.vector_store %arg11[%c0_16, %c0_17], %14 {strides = array<i32>} : memref<8x8xf32, #tpu.memory_space<vmem>>, vector<8x1xf32>,
    %c0_18 = arith.constant 0 : index
    %c0_19 = arith.constant 0 : index
    %27 = vector.load %arg13[%c0_18, %c0_19] : memref<8x32xf32, #tpu.memory_space<vmem>>, vector<8x4xf32>
    %28 = vector.broadcast %16 : vector<8x1xf32> to vector<8x4xf32>
    %29 = arith.mulf %28, %27 : vector<8x4xf32>
    %cst_20 = arith.constant dense<0.000000e+00> : vector<8x4xf32>
    %30 = tpu.matmul %19, %9, %cst_20 {dimension_numbers = #tpu.dot_dimension_numbers<[1], [0], [0], [1], [0, 0, 1, 1], [], []>} : vector<8x8xf32>, vector<8x4xf32>, vector<8x4xf32> -> vector<8x4xf32>
    %31 = arith.addf %29, %30 : vector<8x4xf32>
    %c0_21 = arith.constant 0 : index
    %c0_22 = arith.constant 0 : index
    %32 = vector.load %arg13[%c0_21, %c0_22] : memref<8x32xf32, #tpu.memory_space<vmem>>, vector<8x4xf32>
    tpu.vector_store %arg13[%c0_21, %c0_22], %31 {strides = array<i32>} : memref<8x32xf32, #tpu.memory_space<vmem>>, vector<8x4xf32>,
    %c0_23 = arith.constant 0 : index
    %c4 = arith.constant 4 : index
    %33 = vector.load %arg10[%c0_23, %c4] : memref<8x32xf32, #tpu.memory_space<vmem>>, vector<8x4xf32>
    %34 = vector.extract_strided_slice %4 {offsets = [0, 4], sizes = [8, 4], strides = [1, 1]} : vector<8x32xf32> to vector<8x4xf32>
    %35 = vector.extract_strided_slice %6 {offsets = [0, 4], sizes = [8, 4], strides = [1, 1]} : vector<8x32xf32> to vector<8x4xf32>
    %cst_24 = arith.constant dense<0.000000e+00> : vector<8x8xf32>
    %36 = tpu.matmul %33, %34, %cst_24 {dimension_numbers = #tpu.dot_dimension_numbers<[1], [1], [0], [0], [0, 0, 1, 0], [], []>} : vector<8x4xf32>, vector<8x4xf32>, vector<8x8xf32> -> vector<8x8xf32>
    %c0_25 = arith.constant 0 : index
    %c1 = arith.constant 1 : index
    %37 = vector.load %arg11[%c0_25, %c1] : memref<8x8xf32, #tpu.memory_space<vmem>>, vector<8x1xf32>
    %cst_26 = arith.constant dense<0xFF800000> : vector<8xf32>
    %38 = vector.multi_reduction <maximumf>, %36, %cst_26 [1] : vector<8x8xf32> to vector<8xf32>
    %39 = vector.shape_cast %38 : vector<8xf32> to vector<8x1xf32>
    %40 = arith.maximumf %37, %39 : vector<8x1xf32>
    %41 = arith.subf %37, %40 : vector<8x1xf32>
    %42 = math.exp %41 : vector<8x1xf32>
    %43 = vector.broadcast %40 : vector<8x1xf32> to vector<8x8xf32>
    %44 = arith.subf %36, %43 : vector<8x8xf32>
    %45 = math.exp %44 : vector<8x8xf32>
    %c0_27 = arith.constant 0 : index
    %c1_28 = arith.constant 1 : index
    %46 = vector.load %arg12[%c0_27, %c1_28] : memref<8x8xf32, #tpu.memory_space<vmem>>, vector<8x1xf32>
    %47 = arith.mulf %42, %46 : vector<8x1xf32>
    %cst_29 = arith.constant dense<0.000000e+00> : vector<8xf32>
    %48 = vector.multi_reduction <add>, %45, %cst_29 [1] : vector<8x8xf32> to vector<8xf32>
    %49 = vector.shape_cast %48 : vector<8xf32> to vector<8x1xf32>
    %50 = arith.addf %47, %49 : vector<8x1xf32>
    %c0_30 = arith.constant 0 : index
    %c1_31 = arith.constant 1 : index
    %51 = vector.load %arg12[%c0_30, %c1_31] : memref<8x8xf32, #tpu.memory_space<vmem>>, vector<8x1xf32>
    tpu.vector_store %arg12[%c0_30, %c1_31], %50 {strides = array<i32>} : memref<8x8xf32, #tpu.memory_space<vmem>>, vector<8x1xf32>,
    %c0_32 = arith.constant 0 : index
    %c1_33 = arith.constant 1 : index
    %52 = vector.load %arg11[%c0_32, %c1_33] : memref<8x8xf32, #tpu.memory_space<vmem>>, vector<8x1xf32>
    tpu.vector_store %arg11[%c0_32, %c1_33], %40 {strides = array<i32>} : memref<8x8xf32, #tpu.memory_space<vmem>>, vector<8x1xf32>,
    %c0_34 = arith.constant 0 : index
    %c4_35 = arith.constant 4 : index
    %53 = vector.load %arg13[%c0_34, %c4_35] : memref<8x32xf32, #tpu.memory_space<vmem>>, vector<8x4xf32>
    %54 = vector.broadcast %42 : vector<8x1xf32> to vector<8x4xf32>
    %55 = arith.mulf %54, %53 : vector<8x4xf32>
    %cst_36 = arith.constant dense<0.000000e+00> : vector<8x4xf32>
    %56 = tpu.matmul %45, %35, %cst_36 {dimension_numbers = #tpu.dot_dimension_numbers<[1], [0], [0], [1], [0, 0, 1, 1], [], []>} : vector<8x8xf32>, vector<8x4xf32>, vector<8x4xf32> -> vector<8x4xf32>
    %57 = arith.addf %55, %56 : vector<8x4xf32>
    %c0_37 = arith.constant 0 : index
    %c4_38 = arith.constant 4 : index
    %58 = vector.load %arg13[%c0_37, %c4_38] : memref<8x32xf32, #tpu.memory_space<vmem>>, vector<8x4xf32>
    tpu.vector_store %arg13[%c0_37, %c4_38], %57 {strides = array<i32>} : memref<8x32xf32, #tpu.memory_space<vmem>>, vector<8x4xf32>,
    %c0_39 = arith.constant 0 : index
    %c8 = arith.constant 8 : index
    %59 = vector.load %arg10[%c0_39, %c8] : memref<8x32xf32, #tpu.memory_space<vmem>>, vector<8x4xf32>
    %60 = vector.extract_strided_slice %4 {offsets = [0, 8], sizes = [8, 4], strides = [1, 1]} : vector<8x32xf32> to vector<8x4xf32>
    %61 = vector.extract_strided_slice %6 {offsets = [0, 8], sizes = [8, 4], strides = [1, 1]} : vector<8x32xf32> to vector<8x4xf32>
    %cst_40 = arith.constant dense<0.000000e+00> : vector<8x8xf32>
    %62 = tpu.matmul %59, %60, %cst_40 {dimension_numbers = #tpu.dot_dimension_numbers<[1], [1], [0], [0], [0, 0, 1, 0], [], []>} : vector<8x4xf32>, vector<8x4xf32>, vector<8x8xf32> -> vector<8x8xf32>
    %c0_41 = arith.constant 0 : index
    %c2 = arith.constant 2 : index
    %63 = vector.load %arg11[%c0_41, %c2] : memref<8x8xf32, #tpu.memory_space<vmem>>, vector<8x1xf32>
    %cst_42 = arith.constant dense<0xFF800000> : vector<8xf32>
    %64 = vector.multi_reduction <maximumf>, %62, %cst_42 [1] : vector<8x8xf32> to vector<8xf32>
    %65 = vector.shape_cast %64 : vector<8xf32> to vector<8x1xf32>
    %66 = arith.maximumf %63, %65 : vector<8x1xf32>
    %67 = arith.subf %63, %66 : vector<8x1xf32>
    %68 = math.exp %67 : vector<8x1xf32>
    %69 = vector.broadcast %66 : vector<8x1xf32> to vector<8x8xf32>
    %70 = arith.subf %62, %69 : vector<8x8xf32>
    %71 = math.exp %70 : vector<8x8xf32>
    %c0_43 = arith.constant 0 : index
    %c2_44 = arith.constant 2 : index
    %72 = vector.load %arg12[%c0_43, %c2_44] : memref<8x8xf32, #tpu.memory_space<vmem>>, vector<8x1xf32>
    %73 = arith.mulf %68, %72 : vector<8x1xf32>
    %cst_45 = arith.constant dense<0.000000e+00> : vector<8xf32>
    %74 = vector.multi_reduction <add>, %71, %cst_45 [1] : vector<8x8xf32> to vector<8xf32>
    %75 = vector.shape_cast %74 : vector<8xf32> to vector<8x1xf32>
    %76 = arith.addf %73, %75 : vector<8x1xf32>
    %c0_46 = arith.constant 0 : index
    %c2_47 = arith.constant 2 : index
    %77 = vector.load %arg12[%c0_46, %c2_47] : memref<8x8xf32, #tpu.memory_space<vmem>>, vector<8x1xf32>
    tpu.vector_store %arg12[%c0_46, %c2_47], %76 {strides = array<i32>} : memref<8x8xf32, #tpu.memory_space<vmem>>, vector<8x1xf32>,
    %c0_48 = arith.constant 0 : index
    %c2_49 = arith.constant 2 : index
    %78 = vector.load %arg11[%c0_48, %c2_49] : memref<8x8xf32, #tpu.memory_space<vmem>>, vector<8x1xf32>
    tpu.vector_store %arg11[%c0_48, %c2_49], %66 {strides = array<i32>} : memref<8x8xf32, #tpu.memory_space<vmem>>, vector<8x1xf32>,
    %c0_50 = arith.constant 0 : index
    %c8_51 = arith.constant 8 : index
    %79 = vector.load %arg13[%c0_50, %c8_51] : memref<8x32xf32, #tpu.memory_space<vmem>>, vector<8x4xf32>
    %80 = vector.broadcast %68 : vector<8x1xf32> to vector<8x4xf32>
    %81 = arith.mulf %80, %79 : vector<8x4xf32>
    %cst_52 = arith.constant dense<0.000000e+00> : vector<8x4xf32>
    %82 = tpu.matmul %71, %61, %cst_52 {dimension_numbers = #tpu.dot_dimension_numbers<[1], [0], [0], [1], [0, 0, 1, 1], [], []>} : vector<8x8xf32>, vector<8x4xf32>, vector<8x4xf32> -> vector<8x4xf32>
    %83 = arith.addf %81, %82 : vector<8x4xf32>
    %c0_53 = arith.constant 0 : index
    %c8_54 = arith.constant 8 : index
    %84 = vector.load %arg13[%c0_53, %c8_54] : memref<8x32xf32, #tpu.memory_space<vmem>>, vector<8x4xf32>
    tpu.vector_store %arg13[%c0_53, %c8_54], %83 {strides = array<i32>} : memref<8x32xf32, #tpu.memory_space<vmem>>, vector<8x4xf32>,
    %c0_55 = arith.constant 0 : index
    %c12 = arith.constant 12 : index
    %85 = vector.load %arg10[%c0_55, %c12] : memref<8x32xf32, #tpu.memory_space<vmem>>, vector<8x4xf32>
    %86 = vector.extract_strided_slice %4 {offsets = [0, 12], sizes = [8, 4], strides = [1, 1]} : vector<8x32xf32> to vector<8x4xf32>
    %87 = vector.extract_strided_slice %6 {offsets = [0, 12], sizes = [8, 4], strides = [1, 1]} : vector<8x32xf32> to vector<8x4xf32>
    %cst_56 = arith.constant dense<0.000000e+00> : vector<8x8xf32>
    %88 = tpu.matmul %85, %86, %cst_56 {dimension_numbers = #tpu.dot_dimension_numbers<[1], [1], [0], [0], [0, 0, 1, 0], [], []>} : vector<8x4xf32>, vector<8x4xf32>, vector<8x8xf32> -> vector<8x8xf32>
    %c0_57 = arith.constant 0 : index
    %c3 = arith.constant 3 : index
    %89 = vector.load %arg11[%c0_57, %c3] : memref<8x8xf32, #tpu.memory_space<vmem>>, vector<8x1xf32>
    %cst_58 = arith.constant dense<0xFF800000> : vector<8xf32>
    %90 = vector.multi_reduction <maximumf>, %88, %cst_58 [1] : vector<8x8xf32> to vector<8xf32>
    %91 = vector.shape_cast %90 : vector<8xf32> to vector<8x1xf32>
    %92 = arith.maximumf %89, %91 : vector<8x1xf32>
    %93 = arith.subf %89, %92 : vector<8x1xf32>
    %94 = math.exp %93 : vector<8x1xf32>
    %95 = vector.broadcast %92 : vector<8x1xf32> to vector<8x8xf32>
    %96 = arith.subf %88, %95 : vector<8x8xf32>
    %97 = math.exp %96 : vector<8x8xf32>
    %c0_59 = arith.constant 0 : index
    %c3_60 = arith.constant 3 : index
    %98 = vector.load %arg12[%c0_59, %c3_60] : memref<8x8xf32, #tpu.memory_space<vmem>>, vector<8x1xf32>
    %99 = arith.mulf %94, %98 : vector<8x1xf32>
    %cst_61 = arith.constant dense<0.000000e+00> : vector<8xf32>
    %100 = vector.multi_reduction <add>, %97, %cst_61 [1] : vector<8x8xf32> to vector<8xf32>
    %101 = vector.shape_cast %100 : vector<8xf32> to vector<8x1xf32>
    %102 = arith.addf %99, %101 : vector<8x1xf32>
    %c0_62 = arith.constant 0 : index
    %c3_63 = arith.constant 3 : index
    %103 = vector.load %arg12[%c0_62, %c3_63] : memref<8x8xf32, #tpu.memory_space<vmem>>, vector<8x1xf32>
    tpu.vector_store %arg12[%c0_62, %c3_63], %102 {strides = array<i32>} : memref<8x8xf32, #tpu.memory_space<vmem>>, vector<8x1xf32>,
    %c0_64 = arith.constant 0 : index
    %c3_65 = arith.constant 3 : index
    %104 = vector.load %arg11[%c0_64, %c3_65] : memref<8x8xf32, #tpu.memory_space<vmem>>, vector<8x1xf32>
    tpu.vector_store %arg11[%c0_64, %c3_65], %92 {strides = array<i32>} : memref<8x8xf32, #tpu.memory_space<vmem>>, vector<8x1xf32>,
    %c0_66 = arith.constant 0 : index
    %c12_67 = arith.constant 12 : index
    %105 = vector.load %arg13[%c0_66, %c12_67] : memref<8x32xf32, #tpu.memory_space<vmem>>, vector<8x4xf32>
    %106 = vector.broadcast %94 : vector<8x1xf32> to vector<8x4xf32>
    %107 = arith.mulf %106, %105 : vector<8x4xf32>
    %cst_68 = arith.constant dense<0.000000e+00> : vector<8x4xf32>
    %108 = tpu.matmul %97, %87, %cst_68 {dimension_numbers = #tpu.dot_dimension_numbers<[1], [0], [0], [1], [0, 0, 1, 1], [], []>} : vector<8x8xf32>, vector<8x4xf32>, vector<8x4xf32> -> vector<8x4xf32>
    %109 = arith.addf %107, %108 : vector<8x4xf32>
    %c0_69 = arith.constant 0 : index
    %c12_70 = arith.constant 12 : index
    %110 = vector.load %arg13[%c0_69, %c12_70] : memref<8x32xf32, #tpu.memory_space<vmem>>, vector<8x4xf32>
    tpu.vector_store %arg13[%c0_69, %c12_70], %109 {strides = array<i32>} : memref<8x32xf32, #tpu.memory_space<vmem>>, vector<8x4xf32>,
    %c0_71 = arith.constant 0 : index
    %c16 = arith.constant 16 : index
    %111 = vector.load %arg10[%c0_71, %c16] : memref<8x32xf32, #tpu.memory_space<vmem>>, vector<8x4xf32>
    %112 = vector.extract_strided_slice %4 {offsets = [0, 16], sizes = [8, 4], strides = [1, 1]} : vector<8x32xf32> to vector<8x4xf32>
    %113 = vector.extract_strided_slice %6 {offsets = [0, 16], sizes = [8, 4], strides = [1, 1]} : vector<8x32xf32> to vector<8x4xf32>
    %cst_72 = arith.constant dense<0.000000e+00> : vector<8x8xf32>
    %114 = tpu.matmul %111, %112, %cst_72 {dimension_numbers = #tpu.dot_dimension_numbers<[1], [1], [0], [0], [0, 0, 1, 0], [], []>} : vector<8x4xf32>, vector<8x4xf32>, vector<8x8xf32> -> vector<8x8xf32>
    %c0_73 = arith.constant 0 : index
    %c4_74 = arith.constant 4 : index
    %115 = vector.load %arg11[%c0_73, %c4_74] : memref<8x8xf32, #tpu.memory_space<vmem>>, vector<8x1xf32>
    %cst_75 = arith.constant dense<0xFF800000> : vector<8xf32>
    %116 = vector.multi_reduction <maximumf>, %114, %cst_75 [1] : vector<8x8xf32> to vector<8xf32>
    %117 = vector.shape_cast %116 : vector<8xf32> to vector<8x1xf32>
    %118 = arith.maximumf %115, %117 : vector<8x1xf32>
    %119 = arith.subf %115, %118 : vector<8x1xf32>
    %120 = math.exp %119 : vector<8x1xf32>
    %121 = vector.broadcast %118 : vector<8x1xf32> to vector<8x8xf32>
    %122 = arith.subf %114, %121 : vector<8x8xf32>
    %123 = math.exp %122 : vector<8x8xf32>
    %c0_76 = arith.constant 0 : index
    %c4_77 = arith.constant 4 : index
    %124 = vector.load %arg12[%c0_76, %c4_77] : memref<8x8xf32, #tpu.memory_space<vmem>>, vector<8x1xf32>
    %125 = arith.mulf %120, %124 : vector<8x1xf32>
    %cst_78 = arith.constant dense<0.000000e+00> : vector<8xf32>
    %126 = vector.multi_reduction <add>, %123, %cst_78 [1] : vector<8x8xf32> to vector<8xf32>
    %127 = vector.shape_cast %126 : vector<8xf32> to vector<8x1xf32>
    %128 = arith.addf %125, %127 : vector<8x1xf32>
    %c0_79 = arith.constant 0 : index
    %c4_80 = arith.constant 4 : index
    %129 = vector.load %arg12[%c0_79, %c4_80] : memref<8x8xf32, #tpu.memory_space<vmem>>, vector<8x1xf32>
    tpu.vector_store %arg12[%c0_79, %c4_80], %128 {strides = array<i32>} : memref<8x8xf32, #tpu.memory_space<vmem>>, vector<8x1xf32>,
    %c0_81 = arith.constant 0 : index
    %c4_82 = arith.constant 4 : index
    %130 = vector.load %arg11[%c0_81, %c4_82] : memref<8x8xf32, #tpu.memory_space<vmem>>, vector<8x1xf32>
    tpu.vector_store %arg11[%c0_81, %c4_82], %118 {strides = array<i32>} : memref<8x8xf32, #tpu.memory_space<vmem>>, vector<8x1xf32>,
    %c0_83 = arith.constant 0 : index
    %c16_84 = arith.constant 16 : index
    %131 = vector.load %arg13[%c0_83, %c16_84] : memref<8x32xf32, #tpu.memory_space<vmem>>, vector<8x4xf32>
    %132 = vector.broadcast %120 : vector<8x1xf32> to vector<8x4xf32>
    %133 = arith.mulf %132, %131 : vector<8x4xf32>
    %cst_85 = arith.constant dense<0.000000e+00> : vector<8x4xf32>
    %134 = tpu.matmul %123, %113, %cst_85 {dimension_numbers = #tpu.dot_dimension_numbers<[1], [0], [0], [1], [0, 0, 1, 1], [], []>} : vector<8x8xf32>, vector<8x4xf32>, vector<8x4xf32> -> vector<8x4xf32>
    %135 = arith.addf %133, %134 : vector<8x4xf32>
    %c0_86 = arith.constant 0 : index
    %c16_87 = arith.constant 16 : index
    %136 = vector.load %arg13[%c0_86, %c16_87] : memref<8x32xf32, #tpu.memory_space<vmem>>, vector<8x4xf32>
    tpu.vector_store %arg13[%c0_86, %c16_87], %135 {strides = array<i32>} : memref<8x32xf32, #tpu.memory_space<vmem>>, vector<8x4xf32>,
    %c0_88 = arith.constant 0 : index
    %c20 = arith.constant 20 : index
    %137 = vector.load %arg10[%c0_88, %c20] : memref<8x32xf32, #tpu.memory_space<vmem>>, vector<8x4xf32>
    %138 = vector.extract_strided_slice %4 {offsets = [0, 20], sizes = [8, 4], strides = [1, 1]} : vector<8x32xf32> to vector<8x4xf32>
    %139 = vector.extract_strided_slice %6 {offsets = [0, 20], sizes = [8, 4], strides = [1, 1]} : vector<8x32xf32> to vector<8x4xf32>
    %cst_89 = arith.constant dense<0.000000e+00> : vector<8x8xf32>
    %140 = tpu.matmul %137, %138, %cst_89 {dimension_numbers = #tpu.dot_dimension_numbers<[1], [1], [0], [0], [0, 0, 1, 0], [], []>} : vector<8x4xf32>, vector<8x4xf32>, vector<8x8xf32> -> vector<8x8xf32>
    %c0_90 = arith.constant 0 : index
    %c5 = arith.constant 5 : index
    %141 = vector.load %arg11[%c0_90, %c5] : memref<8x8xf32, #tpu.memory_space<vmem>>, vector<8x1xf32>
    %cst_91 = arith.constant dense<0xFF800000> : vector<8xf32>
    %142 = vector.multi_reduction <maximumf>, %140, %cst_91 [1] : vector<8x8xf32> to vector<8xf32>
    %143 = vector.shape_cast %142 : vector<8xf32> to vector<8x1xf32>
    %144 = arith.maximumf %141, %143 : vector<8x1xf32>
    %145 = arith.subf %141, %144 : vector<8x1xf32>
    %146 = math.exp %145 : vector<8x1xf32>
    %147 = vector.broadcast %144 : vector<8x1xf32> to vector<8x8xf32>
    %148 = arith.subf %140, %147 : vector<8x8xf32>
    %149 = math.exp %148 : vector<8x8xf32>
    %c0_92 = arith.constant 0 : index
    %c5_93 = arith.constant 5 : index
    %150 = vector.load %arg12[%c0_92, %c5_93] : memref<8x8xf32, #tpu.memory_space<vmem>>, vector<8x1xf32>
    %151 = arith.mulf %146, %150 : vector<8x1xf32>
    %cst_94 = arith.constant dense<0.000000e+00> : vector<8xf32>
    %152 = vector.multi_reduction <add>, %149, %cst_94 [1] : vector<8x8xf32> to vector<8xf32>
    %153 = vector.shape_cast %152 : vector<8xf32> to vector<8x1xf32>
    %154 = arith.addf %151, %153 : vector<8x1xf32>
    %c0_95 = arith.constant 0 : index
    %c5_96 = arith.constant 5 : index
    %155 = vector.load %arg12[%c0_95, %c5_96] : memref<8x8xf32, #tpu.memory_space<vmem>>, vector<8x1xf32>
    tpu.vector_store %arg12[%c0_95, %c5_96], %154 {strides = array<i32>} : memref<8x8xf32, #tpu.memory_space<vmem>>, vector<8x1xf32>,
    %c0_97 = arith.constant 0 : index
    %c5_98 = arith.constant 5 : index
    %156 = vector.load %arg11[%c0_97, %c5_98] : memref<8x8xf32, #tpu.memory_space<vmem>>, vector<8x1xf32>
    tpu.vector_store %arg11[%c0_97, %c5_98], %144 {strides = array<i32>} : memref<8x8xf32, #tpu.memory_space<vmem>>, vector<8x1xf32>,
    %c0_99 = arith.constant 0 : index
    %c20_100 = arith.constant 20 : index
    %157 = vector.load %arg13[%c0_99, %c20_100] : memref<8x32xf32, #tpu.memory_space<vmem>>, vector<8x4xf32>
    %158 = vector.broadcast %146 : vector<8x1xf32> to vector<8x4xf32>
    %159 = arith.mulf %158, %157 : vector<8x4xf32>
    %cst_101 = arith.constant dense<0.000000e+00> : vector<8x4xf32>
    %160 = tpu.matmul %149, %139, %cst_101 {dimension_numbers = #tpu.dot_dimension_numbers<[1], [0], [0], [1], [0, 0, 1, 1], [], []>} : vector<8x8xf32>, vector<8x4xf32>, vector<8x4xf32> -> vector<8x4xf32>
    %161 = arith.addf %159, %160 : vector<8x4xf32>
    %c0_102 = arith.constant 0 : index
    %c20_103 = arith.constant 20 : index
    %162 = vector.load %arg13[%c0_102, %c20_103] : memref<8x32xf32, #tpu.memory_space<vmem>>, vector<8x4xf32>
    tpu.vector_store %arg13[%c0_102, %c20_103], %161 {strides = array<i32>} : memref<8x32xf32, #tpu.memory_space<vmem>>, vector<8x4xf32>,
    %c0_104 = arith.constant 0 : index
    %c24 = arith.constant 24 : index
    %163 = vector.load %arg10[%c0_104, %c24] : memref<8x32xf32, #tpu.memory_space<vmem>>, vector<8x4xf32>
    %164 = vector.extract_strided_slice %4 {offsets = [0, 24], sizes = [8, 4], strides = [1, 1]} : vector<8x32xf32> to vector<8x4xf32>
    %165 = vector.extract_strided_slice %6 {offsets = [0, 24], sizes = [8, 4], strides = [1, 1]} : vector<8x32xf32> to vector<8x4xf32>
    %cst_105 = arith.constant dense<0.000000e+00> : vector<8x8xf32>
    %166 = tpu.matmul %163, %164, %cst_105 {dimension_numbers = #tpu.dot_dimension_numbers<[1], [1], [0], [0], [0, 0, 1, 0], [], []>} : vector<8x4xf32>, vector<8x4xf32>, vector<8x8xf32> -> vector<8x8xf32>
    %c0_106 = arith.constant 0 : index
    %c6 = arith.constant 6 : index
    %167 = vector.load %arg11[%c0_106, %c6] : memref<8x8xf32, #tpu.memory_space<vmem>>, vector<8x1xf32>
    %cst_107 = arith.constant dense<0xFF800000> : vector<8xf32>
    %168 = vector.multi_reduction <maximumf>, %166, %cst_107 [1] : vector<8x8xf32> to vector<8xf32>
    %169 = vector.shape_cast %168 : vector<8xf32> to vector<8x1xf32>
    %170 = arith.maximumf %167, %169 : vector<8x1xf32>
    %171 = arith.subf %167, %170 : vector<8x1xf32>
    %172 = math.exp %171 : vector<8x1xf32>
    %173 = vector.broadcast %170 : vector<8x1xf32> to vector<8x8xf32>
    %174 = arith.subf %166, %173 : vector<8x8xf32>
    %175 = math.exp %174 : vector<8x8xf32>
    %c0_108 = arith.constant 0 : index
    %c6_109 = arith.constant 6 : index
    %176 = vector.load %arg12[%c0_108, %c6_109] : memref<8x8xf32, #tpu.memory_space<vmem>>, vector<8x1xf32>
    %177 = arith.mulf %172, %176 : vector<8x1xf32>
    %cst_110 = arith.constant dense<0.000000e+00> : vector<8xf32>
    %178 = vector.multi_reduction <add>, %175, %cst_110 [1] : vector<8x8xf32> to vector<8xf32>
    %179 = vector.shape_cast %178 : vector<8xf32> to vector<8x1xf32>
    %180 = arith.addf %177, %179 : vector<8x1xf32>
    %c0_111 = arith.constant 0 : index
    %c6_112 = arith.constant 6 : index
    %181 = vector.load %arg12[%c0_111, %c6_112] : memref<8x8xf32, #tpu.memory_space<vmem>>, vector<8x1xf32>
    tpu.vector_store %arg12[%c0_111, %c6_112], %180 {strides = array<i32>} : memref<8x8xf32, #tpu.memory_space<vmem>>, vector<8x1xf32>,
    %c0_113 = arith.constant 0 : index
    %c6_114 = arith.constant 6 : index
    %182 = vector.load %arg11[%c0_113, %c6_114] : memref<8x8xf32, #tpu.memory_space<vmem>>, vector<8x1xf32>
    tpu.vector_store %arg11[%c0_113, %c6_114], %170 {strides = array<i32>} : memref<8x8xf32, #tpu.memory_space<vmem>>, vector<8x1xf32>,
    %c0_115 = arith.constant 0 : index
    %c24_116 = arith.constant 24 : index
    %183 = vector.load %arg13[%c0_115, %c24_116] : memref<8x32xf32, #tpu.memory_space<vmem>>, vector<8x4xf32>
    %184 = vector.broadcast %172 : vector<8x1xf32> to vector<8x4xf32>
    %185 = arith.mulf %184, %183 : vector<8x4xf32>
    %cst_117 = arith.constant dense<0.000000e+00> : vector<8x4xf32>
    %186 = tpu.matmul %175, %165, %cst_117 {dimension_numbers = #tpu.dot_dimension_numbers<[1], [0], [0], [1], [0, 0, 1, 1], [], []>} : vector<8x8xf32>, vector<8x4xf32>, vector<8x4xf32> -> vector<8x4xf32>
    %187 = arith.addf %185, %186 : vector<8x4xf32>
    %c0_118 = arith.constant 0 : index
    %c24_119 = arith.constant 24 : index
    %188 = vector.load %arg13[%c0_118, %c24_119] : memref<8x32xf32, #tpu.memory_space<vmem>>, vector<8x4xf32>
    tpu.vector_store %arg13[%c0_118, %c24_119], %187 {strides = array<i32>} : memref<8x32xf32, #tpu.memory_space<vmem>>, vector<8x4xf32>,
    %c0_120 = arith.constant 0 : index
    %c28 = arith.constant 28 : index
    %189 = vector.load %arg10[%c0_120, %c28] : memref<8x32xf32, #tpu.memory_space<vmem>>, vector<8x4xf32>
    %190 = vector.extract_strided_slice %4 {offsets = [0, 28], sizes = [8, 4], strides = [1, 1]} : vector<8x32xf32> to vector<8x4xf32>
    %191 = vector.extract_strided_slice %6 {offsets = [0, 28], sizes = [8, 4], strides = [1, 1]} : vector<8x32xf32> to vector<8x4xf32>
    %cst_121 = arith.constant dense<0.000000e+00> : vector<8x8xf32>
    %192 = tpu.matmul %189, %190, %cst_121 {dimension_numbers = #tpu.dot_dimension_numbers<[1], [1], [0], [0], [0, 0, 1, 0], [], []>} : vector<8x4xf32>, vector<8x4xf32>, vector<8x8xf32> -> vector<8x8xf32>
    %c0_122 = arith.constant 0 : index
    %c7 = arith.constant 7 : index
    %193 = vector.load %arg11[%c0_122, %c7] : memref<8x8xf32, #tpu.memory_space<vmem>>, vector<8x1xf32>
    %cst_123 = arith.constant dense<0xFF800000> : vector<8xf32>
    %194 = vector.multi_reduction <maximumf>, %192, %cst_123 [1] : vector<8x8xf32> to vector<8xf32>
    %195 = vector.shape_cast %194 : vector<8xf32> to vector<8x1xf32>
    %196 = arith.maximumf %193, %195 : vector<8x1xf32>
    %197 = arith.subf %193, %196 : vector<8x1xf32>
    %198 = math.exp %197 : vector<8x1xf32>
    %199 = vector.broadcast %196 : vector<8x1xf32> to vector<8x8xf32>
    %200 = arith.subf %192, %199 : vector<8x8xf32>
    %201 = math.exp %200 : vector<8x8xf32>
    %c0_124 = arith.constant 0 : index
    %c7_125 = arith.constant 7 : index
    %202 = vector.load %arg12[%c0_124, %c7_125] : memref<8x8xf32, #tpu.memory_space<vmem>>, vector<8x1xf32>
    %203 = arith.mulf %198, %202 : vector<8x1xf32>
    %cst_126 = arith.constant dense<0.000000e+00> : vector<8xf32>
    %204 = vector.multi_reduction <add>, %201, %cst_126 [1] : vector<8x8xf32> to vector<8xf32>
    %205 = vector.shape_cast %204 : vector<8xf32> to vector<8x1xf32>
    %206 = arith.addf %203, %205 : vector<8x1xf32>
    %c0_127 = arith.constant 0 : index
    %c7_128 = arith.constant 7 : index
    %207 = vector.load %arg12[%c0_127, %c7_128] : memref<8x8xf32, #tpu.memory_space<vmem>>, vector<8x1xf32>
    tpu.vector_store %arg12[%c0_127, %c7_128], %206 {strides = array<i32>} : memref<8x8xf32, #tpu.memory_space<vmem>>, vector<8x1xf32>,
    %c0_129 = arith.constant 0 : index
    %c7_130 = arith.constant 7 : index
    %208 = vector.load %arg11[%c0_129, %c7_130] : memref<8x8xf32, #tpu.memory_space<vmem>>, vector<8x1xf32>
    tpu.vector_store %arg11[%c0_129, %c7_130], %196 {strides = array<i32>} : memref<8x8xf32, #tpu.memory_space<vmem>>, vector<8x1xf32>,
    %c0_131 = arith.constant 0 : index
    %c28_132 = arith.constant 28 : index
    %209 = vector.load %arg13[%c0_131, %c28_132] : memref<8x32xf32, #tpu.memory_space<vmem>>, vector<8x4xf32>
    %210 = vector.broadcast %198 : vector<8x1xf32> to vector<8x4xf32>
    %211 = arith.mulf %210, %209 : vector<8x4xf32>
    %cst_133 = arith.constant dense<0.000000e+00> : vector<8x4xf32>
    %212 = tpu.matmul %201, %191, %cst_133 {dimension_numbers = #tpu.dot_dimension_numbers<[1], [0], [0], [1], [0, 0, 1, 1], [], []>} : vector<8x8xf32>, vector<8x4xf32>, vector<8x4xf32> -> vector<8x4xf32>
    %213 = arith.addf %211, %212 : vector<8x4xf32>
    %c0_134 = arith.constant 0 : index
    %c28_135 = arith.constant 28 : index
    %214 = vector.load %arg13[%c0_134, %c28_135] : memref<8x32xf32, #tpu.memory_space<vmem>>, vector<8x4xf32>
    tpu.vector_store %arg13[%c0_134, %c28_135], %213 {strides = array<i32>} : memref<8x32xf32, #tpu.memory_space<vmem>>, vector<8x4xf32>,
    %c0_i32_136 = arith.constant 0 : i32
    %215 = arith.cmpi eq, %arg2, %c0_i32_136 : i32
    %216 = arith.extui %215 : i1 to i32
    %c0_i32_137 = arith.constant 0 : i32
    %217 = arith.cmpi ne, %216, %c0_i32_137 : i32
    scf.if %217 {
      %c0_138 = arith.constant 0 : index
      %c0_139 = arith.constant 0 : index
      %218 = vector.load %arg12[%c0_138, %c0_139] : memref<8x8xf32, #tpu.memory_space<vmem>>, vector<8x1xf32>
      %219 = tpu.reciprocal %218 : vector<8x1xf32> -> vector<8x1xf32>
      %c0_140 = arith.constant 0 : index
      %c0_141 = arith.constant 0 : index
      %220 = vector.load %arg13[%c0_140, %c0_141] : memref<8x32xf32, #tpu.memory_space<vmem>>, vector<8x4xf32>
      %221 = vector.broadcast %219 : vector<8x1xf32> to vector<8x4xf32>
      %222 = arith.mulf %220, %221 : vector<8x4xf32>
      %c0_142 = arith.constant 0 : index
      %c0_143 = arith.constant 0 : index
      %223 = vector.load %arg13[%c0_142, %c0_143] : memref<8x32xf32, #tpu.memory_space<vmem>>, vector<8x4xf32>
      tpu.vector_store %arg13[%c0_142, %c0_143], %222 {strides = array<i32>} : memref<8x32xf32, #tpu.memory_space<vmem>>, vector<8x4xf32>,
      %c0_144 = arith.constant 0 : index
      %c1_145 = arith.constant 1 : index
      %224 = vector.load %arg12[%c0_144, %c1_145] : memref<8x8xf32, #tpu.memory_space<vmem>>, vector<8x1xf32>
      %225 = tpu.reciprocal %224 : vector<8x1xf32> -> vector<8x1xf32>
      %c0_146 = arith.constant 0 : index
      %c4_147 = arith.constant 4 : index
      %226 = vector.load %arg13[%c0_146, %c4_147] : memref<8x32xf32, #tpu.memory_space<vmem>>, vector<8x4xf32>
      %227 = vector.broadcast %225 : vector<8x1xf32> to vector<8x4xf32>
      %228 = arith.mulf %226, %227 : vector<8x4xf32>
      %c0_148 = arith.constant 0 : index
      %c4_149 = arith.constant 4 : index
      %229 = vector.load %arg13[%c0_148, %c4_149] : memref<8x32xf32, #tpu.memory_space<vmem>>, vector<8x4xf32>
      tpu.vector_store %arg13[%c0_148, %c4_149], %228 {strides = array<i32>} : memref<8x32xf32, #tpu.memory_space<vmem>>, vector<8x4xf32>,
      %c0_150 = arith.constant 0 : index
      %c2_151 = arith.constant 2 : index
      %230 = vector.load %arg12[%c0_150, %c2_151] : memref<8x8xf32, #tpu.memory_space<vmem>>, vector<8x1xf32>
      %231 = tpu.reciprocal %230 : vector<8x1xf32> -> vector<8x1xf32>
      %c0_152 = arith.constant 0 : index
      %c8_153 = arith.constant 8 : index
      %232 = vector.load %arg13[%c0_152, %c8_153] : memref<8x32xf32, #tpu.memory_space<vmem>>, vector<8x4xf32>
      %233 = vector.broadcast %231 : vector<8x1xf32> to vector<8x4xf32>
      %234 = arith.mulf %232, %233 : vector<8x4xf32>
      %c0_154 = arith.constant 0 : index
      %c8_155 = arith.constant 8 : index
      %235 = vector.load %arg13[%c0_154, %c8_155] : memref<8x32xf32, #tpu.memory_space<vmem>>, vector<8x4xf32>
      tpu.vector_store %arg13[%c0_154, %c8_155], %234 {strides = array<i32>} : memref<8x32xf32, #tpu.memory_space<vmem>>, vector<8x4xf32>,
      %c0_156 = arith.constant 0 : index
      %c3_157 = arith.constant 3 : index
      %236 = vector.load %arg12[%c0_156, %c3_157] : memref<8x8xf32, #tpu.memory_space<vmem>>, vector<8x1xf32>
      %237 = tpu.reciprocal %236 : vector<8x1xf32> -> vector<8x1xf32>
      %c0_158 = arith.constant 0 : index
      %c12_159 = arith.constant 12 : index
      %238 = vector.load %arg13[%c0_158, %c12_159] : memref<8x32xf32, #tpu.memory_space<vmem>>, vector<8x4xf32>
      %239 = vector.broadcast %237 : vector<8x1xf32> to vector<8x4xf32>
      %240 = arith.mulf %238, %239 : vector<8x4xf32>
      %c0_160 = arith.constant 0 : index
      %c12_161 = arith.constant 12 : index
      %241 = vector.load %arg13[%c0_160, %c12_161] : memref<8x32xf32, #tpu.memory_space<vmem>>, vector<8x4xf32>
      tpu.vector_store %arg13[%c0_160, %c12_161], %240 {strides = array<i32>} : memref<8x32xf32, #tpu.memory_space<vmem>>, vector<8x4xf32>,
      %c0_162 = arith.constant 0 : index
      %c4_163 = arith.constant 4 : index
      %242 = vector.load %arg12[%c0_162, %c4_163] : memref<8x8xf32, #tpu.memory_space<vmem>>, vector<8x1xf32>
      %243 = tpu.reciprocal %242 : vector<8x1xf32> -> vector<8x1xf32>
      %c0_164 = arith.constant 0 : index
      %c16_165 = arith.constant 16 : index
      %244 = vector.load %arg13[%c0_164, %c16_165] : memref<8x32xf32, #tpu.memory_space<vmem>>, vector<8x4xf32>
      %245 = vector.broadcast %243 : vector<8x1xf32> to vector<8x4xf32>
      %246 = arith.mulf %244, %245 : vector<8x4xf32>
      %c0_166 = arith.constant 0 : index
      %c16_167 = arith.constant 16 : index
      %247 = vector.load %arg13[%c0_166, %c16_167] : memref<8x32xf32, #tpu.memory_space<vmem>>, vector<8x4xf32>
      tpu.vector_store %arg13[%c0_166, %c16_167], %246 {strides = array<i32>} : memref<8x32xf32, #tpu.memory_space<vmem>>, vector<8x4xf32>,
      %c0_168 = arith.constant 0 : index
      %c5_169 = arith.constant 5 : index
      %248 = vector.load %arg12[%c0_168, %c5_169] : memref<8x8xf32, #tpu.memory_space<vmem>>, vector<8x1xf32>
      %249 = tpu.reciprocal %248 : vector<8x1xf32> -> vector<8x1xf32>
      %c0_170 = arith.constant 0 : index
      %c20_171 = arith.constant 20 : index
      %250 = vector.load %arg13[%c0_170, %c20_171] : memref<8x32xf32, #tpu.memory_space<vmem>>, vector<8x4xf32>
      %251 = vector.broadcast %249 : vector<8x1xf32> to vector<8x4xf32>
      %252 = arith.mulf %250, %251 : vector<8x4xf32>
      %c0_172 = arith.constant 0 : index
      %c20_173 = arith.constant 20 : index
      %253 = vector.load %arg13[%c0_172, %c20_173] : memref<8x32xf32, #tpu.memory_space<vmem>>, vector<8x4xf32>
      tpu.vector_store %arg13[%c0_172, %c20_173], %252 {strides = array<i32>} : memref<8x32xf32, #tpu.memory_space<vmem>>, vector<8x4xf32>,
      %c0_174 = arith.constant 0 : index
      %c6_175 = arith.constant 6 : index
      %254 = vector.load %arg12[%c0_174, %c6_175] : memref<8x8xf32, #tpu.memory_space<vmem>>, vector<8x1xf32>
      %255 = tpu.reciprocal %254 : vector<8x1xf32> -> vector<8x1xf32>
      %c0_176 = arith.constant 0 : index
      %c24_177 = arith.constant 24 : index
      %256 = vector.load %arg13[%c0_176, %c24_177] : memref<8x32xf32, #tpu.memory_space<vmem>>, vector<8x4xf32>
      %257 = vector.broadcast %255 : vector<8x1xf32> to vector<8x4xf32>
      %258 = arith.mulf %256, %257 : vector<8x4xf32>
      %c0_178 = arith.constant 0 : index
      %c24_179 = arith.constant 24 : index
      %259 = vector.load %arg13[%c0_178, %c24_179] : memref<8x32xf32, #tpu.memory_space<vmem>>, vector<8x4xf32>
      tpu.vector_store %arg13[%c0_178, %c24_179], %258 {strides = array<i32>} : memref<8x32xf32, #tpu.memory_space<vmem>>, vector<8x4xf32>,
      %c0_180 = arith.constant 0 : index
      %c7_181 = arith.constant 7 : index
      %260 = vector.load %arg12[%c0_180, %c7_181] : memref<8x8xf32, #tpu.memory_space<vmem>>, vector<8x1xf32>
      %261 = tpu.reciprocal %260 : vector<8x1xf32> -> vector<8x1xf32>
      %c0_182 = arith.constant 0 : index
      %c28_183 = arith.constant 28 : index
      %262 = vector.load %arg13[%c0_182, %c28_183] : memref<8x32xf32, #tpu.memory_space<vmem>>, vector<8x4xf32>
      %263 = vector.broadcast %261 : vector<8x1xf32> to vector<8x4xf32>
      %264 = arith.mulf %262, %263 : vector<8x4xf32>
      %c0_184 = arith.constant 0 : index
      %c28_185 = arith.constant 28 : index
      %265 = vector.load %arg13[%c0_184, %c28_185] : memref<8x32xf32, #tpu.memory_space<vmem>>, vector<8x4xf32>
      tpu.vector_store %arg13[%c0_184, %c28_185], %264 {strides = array<i32>} : memref<8x32xf32, #tpu.memory_space<vmem>>, vector<8x4xf32>,
      %c0_186 = arith.constant 0 : index
      %c0_187 = arith.constant 0 : index
      %266 = vector.load %arg13[%c0_186, %c0_187] : memref<8x32xf32, #tpu.memory_space<vmem>>, vector<8x32xf32>
      %c0_188 = arith.constant 0 : index
      %c0_189 = arith.constant 0 : index
      %267 = vector.load %arg7[%c0_188, %c0_189] : memref<32x32xf32, #tpu.memory_space<vmem>>, vector<32x32xf32>
      %cst_190 = arith.constant dense<0.000000e+00> : vector<8x32xf32>
      %268 = tpu.matmul %266, %267, %cst_190 {dimension_numbers = #tpu.dot_dimension_numbers<[1], [0], [0], [1], [0, 0, 1, 1], [], []>} : vector<8x32xf32>, vector<32x32xf32>, vector<8x32xf32> -> vector<8x32xf32>
      %c0_191 = arith.constant 0 : index
      %c0_192 = arith.constant 0 : index
      %269 = vector.load %arg8[%c0_191, %c0_192] : memref<1x32xf32, #tpu.memory_space<vmem>>, vector<1x32xf32>
      %270 = vector.broadcast %269 : vector<1x32xf32> to vector<8x32xf32>
      %271 = arith.addf %268, %270 : vector<8x32xf32>
      %c0_193 = arith.constant 0 : index
      %c0_194 = arith.constant 0 : index
      %c0_195 = arith.constant 0 : index
      %272 = vector.load %arg9[%c0_193, %c0_194, %c0_195] : memref<1x8x32xf32, #tpu.memory_space<vmem>>, vector<1x8x32xf32>
      %273 = vector.shape_cast %272 : vector<1x8x32xf32> to vector<8x32xf32>
      %274 = vector.shape_cast %271 : vector<8x32xf32> to vector<1x8x32xf32>
      tpu.vector_store %arg9[%c0_193, %c0_194, %c0_195], %274 {strides = array<i32>} : memref<1x8x32xf32, #tpu.memory_space<vmem>>, vector<1x8x32xf32>,
    } else {
    }
    return
  }
  func.func @transform_0(%arg0: i32, %arg1: i32, %arg2: i32) -> (i32, i32, i32) {
    %c0_i32 = arith.constant 0 : i32
    %c0_i32_0 = arith.constant 0 : i32
    return %arg0, %arg1, %c0_i32 : i32, i32, i32
  }
  func.func @transform_1(%arg0: i32, %arg1: i32, %arg2: i32) -> (i32, i32, i32) {
    %c0_i32 = arith.constant 0 : i32
    %c0_i32_0 = arith.constant 0 : i32
    return %arg0, %arg2, %c0_i32 : i32, i32, i32
  }
  func.func @transform_2(%arg0: i32, %arg1: i32, %arg2: i32) -> (i32, i32, i32) {
    %c0_i32 = arith.constant 0 : i32
    %c0_i32_0 = arith.constant 0 : i32
    return %arg0, %arg2, %c0_i32 : i32, i32, i32
  }
  func.func @transform_3(%arg0: i32, %arg1: i32, %arg2: i32) -> (i32, i32) {
    %c0_i32 = arith.constant 0 : i32
    %c0_i32_0 = arith.constant 0 : i32
    %c0_i32_1 = arith.constant 0 : i32
    return %c0_i32, %c0_i32_0 : i32, i32
  }
  func.func @transform_4(%arg0: i32, %arg1: i32, %arg2: i32) -> (i32, i32) {
    %c0_i32 = arith.constant 0 : i32
    %c0_i32_0 = arith.constant 0 : i32
    %c0_i32_1 = arith.constant 0 : i32
    return %c0_i32, %c0_i32_0 : i32, i32
  }
  func.func @transform_5(%arg0: i32, %arg1: i32, %arg2: i32) -> (i32, i32) {
    %c0_i32 = arith.constant 0 : i32
    %c0_i32_0 = arith.constant 0 : i32
    %c0_i32_1 = arith.constant 0 : i32
    return %c0_i32, %c0_i32_0 : i32, i32
  }
  func.func @transform_6(%arg0: i32, %arg1: i32, %arg2: i32) -> (i32, i32, i32) {
    %c0_i32 = arith.constant 0 : i32
    %c0_i32_0 = arith.constant 0 : i32
    return %arg0, %arg1, %c0_i32 : i32, i32, i32
  }
}

</mosaic_0001>

<bundles_post_ra>
// kernel: tpu_custom_call.1
= control target key start
LH: loop header
LB: loop body
LE: loop exit
PB: predicated region body
PF: predicated region fallthrough
CT: control target
= control target key end

     0   :  { %s3624_s0 = inlined_call_operand.hbm [shape: f32[2,8,32], index: 0, kind: input, shape index: {}]   ;;  %s3625_s1 = inlined_call_operand.hbm [shape: f32[2,8,32], index: 1, kind: input, shape index: {}]   ;;  %s3626_s2 = inlined_call_operand.hbm [shape: f32[2,8,32], index: 2, kind: input, shape index: {}]   ;;  %s3627_s3 = inlined_call_operand.hbm [shape: f32[32,32], index: 3, kind: input, shape index: {}]   ;;  %s3628_s4 = inlined_call_operand.hbm [shape: f32[32,32], index: 4, kind: input, shape index: {}]   ;;  %s3629_s5 = inlined_call_operand.vmem [shape: f32[1,32], index: 5, kind: input, shape index: {}]   ;;  %s3630_s6 = inlined_call_operand.hbm [shape: f32[2,8,32], index: 6, kind: output, shape index: {}]  }
   0x1   :  { %3646 = sst [smem:[#allocation26_spill]] %s3625_s1 }
   0x2   :  { %3647 = sst [smem:[#allocation27_spill]] %s3627_s3 }
   0x3   :  { %11 = vsyncpa [#allocation7], 0 }
   0x4   :  { %13 = vsyncpa [#allocation7 + $0x1], 0 }
   0x5   :  { %14 = vsyncpa [#allocation10], 0 }
   0x6   :  { %16 = vsyncpa [#allocation10 + $0x1], 0 }
   0x7   :  { %17 = vsyncpa [#allocation13], 0 }
   0x8   :  { %18 = vsyncpa [#allocation8], 0 }
   0x9   :  { %20 = vsyncpa [#allocation8 + $0x1], 0  ;;  %s3038_s21 = smov 0   ;;  %s3040_s22 = smov 0  }
   0xa   :  { %s3042_s23 = smov 0   ;;  %s3044_s24 = smov 0  }
   0xb   :  { %s3046_s25 = smov 0   ;;  %s3048_s26 = smov 0  }
   0xc LB: > { %3648 = sst [smem:[#allocation20_spill]] %s2948_s21  ;;  %s3069_s27 = sadd.s32 4294967295, %s2968_s26   ;;  %s2968_s26 = sphi %s3048_s26, %s26_s26   ;;  %s2964_s25 = sphi %s3046_s25, %s3681_s25   ;;  %s2960_s24 = sphi %s3044_s24, %s3680_s24   ;;  %s2956_s23 = sphi %s3042_s23, %s3684_s23   ;;  %s2952_s22 = sphi %s3040_s22, %s3683_s22   ;;  %s2948_s21 = sphi %s3038_s21, %s3682_s21  }
   0xd   : > { %3649 = sst [smem:[#allocation21_spill]] %s2964_s25  ;;  %s2373_s28 = sadd.s32 4294967294, %s2968_s26  }
   0xe   : > { %3650 = sst [smem:[#allocation22_spill]] %s2968_s26  ;;  %p67_p0 = scmp.ne.s32.totalorder %s2952_s22, %s2948_s21 }
   0xf   : > { %p3638_p1 = scmp.eq.s32.totalorder %s3069_s27, 0  ;;  %p218_p3 = scmp.eq.s32.totalorder %s2373_s28, 1 }
  0x10   : > { %p2374_p5 = scmp.ge.s32.totalorder %s2968_s26, 1  ;;  %p225_p7 = scmp.lt.s32.totalorder %s2968_s26, 3 }
  0x11   : > { %p3078_p4 = por %p3638_p1, %p67_p0  ;;  %p3083_p6 = por %p218_p3, %p67_p0 }
  0x12   : > { %p3088_p8 = pnand %p2374_p5, %p225_p7  ;;  %s2970_s8 = smov [#allocation12]  }
  0x13   : > { %s3651_s29 = scalar_select %p3078_p4, 1, 0 }
  0x14   : > { %s3652_s30 = scalar_select %p3083_p6, 1, 0 }
  0x15   : > { %s3654_s7 = scalar_select %p3088_p8, 1, 0 }
  0x16   : > { %3653 = sst [smem:[#allocation23_spill]] %s3652_s30  ;;  %s237_s9 = sshll.u32 %s2970_s8, 4  ;;  %s238_s9 = int_to_ptr.vmem [resolvable:$true] %s237_s9 }
  0x17   : > { %p2582_p9 = pneg %p3088_p8  ;;  %s45_s11 = sadd.s32 1, %s2964_s25 }
  0x18   : > { %s2755_s12 = scalar_lea.vmem %s238_s9, 512  ;;  %p2763_p5 = scmp.lt.s32.totalorder %s238_s9, %s238_s9 }
  0x19   : > { %p3097_p11 = pnand %p2582_p9, %p3638_p1  ;;  %p2756_p13 = scmp.ne.s32.totalorder %s238_s9, %s2755_s12 }
  0x1a   : > { %p2764_p7 = scmp.lt.s32.totalorder %s2755_s12, %s2755_s12 }
  0x1b   : > { %p3639_p12 = pneg %p3097_p11 }
  0x1c   : > { %p2765_p2 = por %p2764_p7, %p2763_p5 }
  0x1d   : > { %p2758_p0 = pnand %p2756_p13, %p3639_p12 }
  0x1f   : > { %p2759_p3 = pneg %p2758_p0 }
  0x21   : > { %p2766_p10 = pnand %p2765_p2, %p2759_p3 }
  0x23   : > { %2769 = shalt.err (!%p2766_p10)
}
  0x24   : > { %s3631_s13 = smov 128   ;;  %s3632_s14 = smov 8  }
  0x25   : > { %s3656_s3 = sld [smem:[#allocation27_spill]]  ;;  %p47_p2 = scmp.ge.s32.totalorder %s45_s11, 2 }
  0x26   : > { %s54_s17 = sadd.s32 1, %s2956_s23  ;;  %p61_p9 = scmp.ne.s32.totalorder %s2956_s23, %s2952_s22 }
  0x27   : > { %p62_p10 = scmp.eq.s32.totalorder %s2968_s26, 0  ;;  %s3686_s11 = smov (%p47_p2, %s45_s11), 0 }
  0x28   : > { %3657 = sst [smem:[#allocation24_spill]] %s3686_s11  ;;  %p3658_p0 = scmp.eq.s32.totalorder %s3069_s27, 1 }
  0x29   : > { %p63_p13 = por %p62_p10, %p61_p9  ;;  %s49_s19 = ssub.s32 %s2964_s25, %s3686_s11 }
  0x2a   : > { %p3123_p3 = por %p3658_p0, %p61_p9  ;;  %p2605_p5 = scmp.lt.s32.totalorder %s2968_s26, 2 }
  0x2b   : > { %2585 = dma.hbm_to_vmem [thread:$0]  (!%p3097_p11), %s3656_s3, 512, %s238_s9, [#allocation13], %s3631_s13, %s3631_s13, %s3632_s14  }
  0x2c   : > { %s3659_s18 = scalar_select %p3123_p3, 1, 0 }
  0x2d   : > { %p52_p7 = scmp.eq.s32.totalorder %s49_s19, 0  ;;  %s3633_s20 = sand.u32 1, %s2956_s23  }
  0x2e   : > { %s3133_s28 = sshll.u32 %s3633_s20, 3  ;;  %s3136_s8 = sshll.u32 %s2964_s25, 7 }
  0x2f   : > { %s3139_s9 = scalar_select %p52_p7, %s2956_s23, %s54_s17  }
  0x30   : > { %p3141_p2 = pnand %p2605_p5, %p63_p13  ;;  %s286_s15 = sand.u32 1, %s2968_s26  }
  0x31   : > { %3660 = sst [smem:[#allocation25_spill]] %s3139_s9  ;;  %s290_s14 = scalar_lea.vmem [#allocation9], %s3133_s28 }
  0x32   : > { %s3662_s1 = sld [smem:[#allocation26_spill]]  ;;  %s298_s20 = sshll.u32 %s290_s14, 4  ;;  %s299_s20 = int_to_ptr.vmem [resolvable:$true] %s298_s20 }
  0x33   : > { %s2973_s3 = smov [#allocation14]   ;;  %s3151_s25 = scalar_lea.sflag [#allocation10], %s286_s15 }
  0x34   : > { %s250_s11 = sshll.u32 %s2973_s3, 4  ;;  %p3640_p9 = pneg %p3141_p2  ;;  %s251_s11 = int_to_ptr.vmem [resolvable:$true] %s250_s11 }
  0x35   : > { %s2783_s17 = scalar_lea.vmem %s299_s20, 128  ;;  %s2974_s9 = smov [#allocation9]  }
  0x36   : > { %p2784_p10 = scmp.ne.s32.totalorder %s299_s20, %s2783_s17  ;;  %s2788_s26 = sshll.u32 %s2974_s9, 4  ;;  %s2789_s26 = int_to_ptr.vmem [resolvable:$false] %s2788_s26 }
  0x37   : > { %s2790_s13 = scalar_lea.vmem %s2789_s26, 256  ;;  %p2791_p5 = scmp.lt.s32.totalorder %s299_s20, %s2789_s26 }
  0x38   : > { %s296_s19 = scalar_lea.hbm %s3662_s1, %s3136_s8  ;;  %p2786_p13 = pnand %p2784_p10, %p3640_p9 }
  0x39   : > { %p2792_p7 = scmp.lt.s32.totalorder %s2790_s13, %s2783_s17 }
  0x3a   : > { %p2787_p0 = pneg %p2786_p13 }
  0x3b   : > { %p2793_p1 = por %p2792_p7, %p2791_p5 }
  0x3d   : > { %p2794_p12 = pnand %p2793_p1, %p2787_p0 }
  0x3f   : > { %2797 = shalt.err (!%p2794_p12)
}
  0x40   : > { %2595 = dma.hbm_to_vmem [thread:$0]  (!%p3141_p2), %s296_s19, 128, %s299_s20, %s3151_s25  }
  0x41   : > { %s2809_s3 = scalar_lea.vmem %s251_s11, 512  ;;  %p3663_p10 = pneg %p3097_p11 }
  0x42   : > { %p2810_p6 = scmp.ne.s32.totalorder %s251_s11, %s2809_s3  ;;  %p2817_p3 = scmp.lt.s32.totalorder %s251_s11, %s251_s11 }
  0x43   : > { %p2818_p4 = scmp.lt.s32.totalorder %s2809_s3, %s2809_s3 }
  0x44   : > { %p2812_p13 = pnand %p2810_p6, %p3663_p10 }
  0x45   : > { %p2819_p8 = por %p2818_p4, %p2817_p3 }
  0x46   : > { %p2813_p9 = pneg %p2812_p13 }
  0x48   : > { %p2820_p5 = pnand %p2819_p8, %p2813_p9 }
  0x4a   : > { %2823 = shalt.err (!%p2820_p5)
}
  0x4b   : > { %s3664_s26 = smov 8   ;;  %s3665_s14 = smov 128  }
  0x4c   : > { %2588 = dma.hbm_to_vmem [thread:$0]  (!%p3097_p11), %s3628_s4, 512, %s251_s11, [#allocation13], %s3665_s14, %s3665_s14, %s3664_s26  }
  0x4d   : > { %s277_s19 = scalar_lea.hbm %s3624_s0, %s3136_s8  ;;  %s271_s17 = scalar_lea.vmem [#allocation6], %s3133_s28 }
  0x4e   : > { %s279_s13 = sshll.u32 %s271_s17, 4  ;;  %s315_s1 = scalar_lea.hbm %s3626_s2, %s3136_s8  ;;  %s280_s13 = int_to_ptr.vmem [resolvable:$true] %s279_s13 }
  0x4f   : > { %s3666_s30 = sand.u32 1, %s2956_s23   ;;  %s2837_s9 = scalar_lea.vmem %s280_s13, 128 }
  0x50   : > { %s268_s21 = scalar_lea.sflag [#allocation7], %s3666_s30  ;;  %p2838_p1 = scmp.ne.s32.totalorder %s280_s13, %s2837_s9 }
  0x51   : > { %p3667_p4 = pneg %p3141_p2  ;;  %s2975_s11 = smov [#allocation6]  }
  0x52   : > { %s2842_s26 = sshll.u32 %s2975_s11, 4  ;;  %s2843_s26 = int_to_ptr.vmem [resolvable:$false] %s2842_s26 }
  0x53   : > { %p2840_p6 = pnand %p2838_p1, %p3667_p4  ;;  %s2844_s14 = scalar_lea.vmem %s2843_s26, 256 }
  0x54   : > { %p2845_p11 = scmp.lt.s32.totalorder %s280_s13, %s2843_s26  ;;  %p2846_p12 = scmp.lt.s32.totalorder %s2844_s14, %s2837_s9 }
  0x55   : > { %p2841_p8 = pneg %p2840_p6 }
  0x56   : > { %p2847_p3 = por %p2846_p12, %p2845_p11 }
  0x58   : > { %p2848_p9 = pnand %p2847_p3, %p2841_p8 }
  0x5a   : > { %2851 = shalt.err (!%p2848_p9)
}
  0x5b   : > { %2592 = dma.hbm_to_vmem [thread:$0]  (!%p3141_p2), %s277_s19, 128, %s280_s13, %s268_s21  }
  0x5c   : > { %s309_s30 = scalar_lea.vmem [#allocation11], %s3133_s28  ;;  %p3668_p7 = pmov %p3667_p4 }
  0x5d   : > { %s317_s15 = sshll.u32 %s309_s30, 4  ;;  %s2976_s16 = smov [#allocation11]   ;;  %s318_s15 = int_to_ptr.vmem [resolvable:$true] %s317_s15 }
  0x5e   : > { %s2865_s20 = scalar_lea.vmem %s318_s15, 128  ;;  %s2870_s17 = sshll.u32 %s2976_s16, 4  ;;  %s2871_s17 = int_to_ptr.vmem [resolvable:$false] %s2870_s17 }
  0x5f   : > { %p2866_p0 = scmp.ne.s32.totalorder %s318_s15, %s2865_s20  ;;  %s2872_s10 = scalar_lea.vmem %s2871_s17, 256 }
  0x60   : > { %p2873_p5 = scmp.lt.s32.totalorder %s318_s15, %s2871_s17  ;;  %p2874_p1 = scmp.lt.s32.totalorder %s2872_s10, %s2865_s20 }
  0x61   : > { %p2868_p10 = pnand %p2866_p0, %p3668_p7 }
  0x62   : > { %p2875_p4 = por %p2874_p1, %p2873_p5 }
  0x63   : > { %p2869_p13 = pneg %p2868_p10 }
  0x65   : > { %p2876_p6 = pnand %p2875_p4, %p2869_p13 }
  0x67   : > { %2879 = shalt.err (!%p2876_p6)
}
  0x68   : > { %2598 = dma.hbm_to_vmem [thread:$0]  (!%p3141_p2), %s315_s1, 128, %s318_s15, %s3151_s25  }
  0x69   : > { %p3669_p8 = scmp.ne.s32.totalorder %s3654_s7, 0 }
  0x6a   : > { %s3203_s19 = sand.u32 (!%p3669_p8), 1, %s2952_s22   ;;  %p3670_p11 = scmp.ne.s32.totalorder (!%p3669_p8), %s3651_s29, 0 }
  0x6b   : > { %326 = sbr.rel (%p3669_p8) target bundleno = 1969 (0x7b1), region = 44  ;;  %s3206_s13 = sshll.u32 (!%p3669_p8), %s3203_s19, 3 }
  0x6c   : > { %s329_s12 = scalar_lea.sflag (!%p3669_p8), [#allocation7], %s3203_s19  ;;  %s332_s3 = scalar_lea.vmem (!%p3669_p8), [#allocation6], %s3206_s13 }
  0x70   : > { %2931 = dma.done.wait (%p3670_p11), %s329_s12, 128  }
  0x71   : > { %2933 = vsyncadd (%p3670_p11), %s329_s12, 4294967168  ;;  %s337_s1 = sand.u32 1, %s3069_s27   ;;  %s341_s7 = scalar_lea.vmem [#allocation9], %s3206_s13 }
  0x72   : > { %s338_s25 = scalar_lea.sflag [#allocation10], %s337_s1 }
  0x73   : > { %2935 = dma.done.wait (%p3670_p11), %s338_s25, 256  }
  0x74   : > { %2937 = vsyncadd (%p3670_p11), %s338_s25, 4294967040  ;;  %s350_s8 = scalar_lea.vmem [#allocation11], %s3206_s13  ;;  %p3671_p2 = scmp.eq.s32.totalorder %s3069_s27, 0 }
  0x76   : > { %2939 = dma.done.wait (%p3671_p2), [#allocation13], 1024   ;;  %p3672_p12 = pmov %p3671_p2 }
  0x77   : > { %vm406_vm0 = vcmask 261120   ;;  %v2977_v0 = vmov 0.0   ;;  %vm2978_vm1 = vmmov 0   ;;  %v405_v1 = vld [vmem:[#allocation12 + $0x18] sm:$0xff]  ;;  %v404_v2 = vld [vmem:[#allocation12 + $0x10] sm:$0xff]  ;;  %v403_v3 = vld [vmem:[#allocation12 + $0x8] sm:$0xff] }
  0x78   : > { %2941 = vsyncadd (%p3672_p12), [#allocation13], 4294966272  ;;  %2464 = vmatprep.subr.mxu0 %v2977_v0  ;;  %2472 = vmatprep.mubr.msk.f32.mxu0 %vm2978_vm1, %v2977_v0  ;;  %485 = vst.msk [vmem:[#allocation5] sm:$0xff] %vm406_vm0, %v2977_v0  ;;  %v402_v4 = vld [vmem:[#allocation12] sm:$0xff]  ;;  %v401_v5 = vld [vmem:[%s332_s3] sm:$0xff]  ;;  %vm489_vm2 = vcmask 31744  }
  0x79   : > { %2475 = vmatprep.subr.mxu1 %v2977_v0  ;;  %2477 = vmatprep.mubr.msk.f32.mxu1 %vm2978_vm1, %v2977_v0  ;;  %v3240_v6 = vld [vmem:[%s341_s7] sm:$0xff]  ;;  %s2979_s27 = smov 124   ;;  %s2980_s29 = smov 120   ;;  %vm482_vm3 = vcmask 64512   ;;  %v2986_v26 = vmov -inf   ;;  %v2987_v27 = vmov 0  }
  0x7a   : > { %2465 = vmatpush3.msra.mxu0 %v405_v1  ;;  %678 = vrot.lane.b32.xlu1 %v3240_v6, %s2979_s27  ;;  %s2981_s9 = smov 116   ;;  %s2982_s11 = smov 112   ;;  %484 = vst.msk [vmem:[#allocation4] sm:$0xff] %vm482_vm3, %v2977_v0  ;;  %483 = vst.msk [vmem:[#allocation3] sm:$0xff] %vm482_vm3, %v2986_v26  ;;  %vm589_vm4 = vcmask 7168   ;;  %v3322_v39 = vld [vmem:[%s350_s8] sm:$0xff] }
  0x7b   : > { %2466 = vmatprep.subr.mxu0 %v2977_v0  ;;  %2476 = vmatpush3.xpose.msk.msra.mxu1 %vm489_vm2, %v3240_v6  ;;  %s2983_s26 = smov 108   ;;  %s2984_s14 = smov 104   ;;  %v2988_v61 = vmov 1   ;;  %v2989_v63 = vmov 2   ;;  %vm776_vm5 = vcmask 15368   ;;  %vm972_vm6 = vcmask 23568  }
  0x7c   : > { %2467 = vmatpush3.msra.mxu0 %v404_v2  ;;  %2480 = vmatprep.subr.mxu1 %v2977_v0  ;;  %s2985_s30 = smov 100   ;;  %vm1167_vm7 = vcmask 31768   ;;  %vm1362_vm8 = vcmask 39968   ;;  %vm1557_vm9 = vcmask 48168   ;;  %vm1752_vm10 = vcmask 56368   ;;  %s2995_s15 = smov 4  }
  0x7d   : > { %2468 = vmatprep.subr.mxu0 %v2977_v0  ;;  %2686 = vset.pattern.permute.xlu0 %v2987_v27  ;;  %vm1947_vm11 = vcmask 64568   ;;  %s2996_s20 = smov 8   ;;  %s2997_s16 = smov 12   ;;  %vm868_vm12 = vcmask 64544   ;;  %vm1063_vm13 = vcmask 97344   ;;  %vm1258_vm14 = vcmask 130144  }
  0x7e   : > { %2469 = vmatpush3.msra.mxu0 %v403_v3  ;;  %2687 = vset.pattern.permute.xlu1 %v2988_v61  ;;  %s2998_s17 = smov 16   ;;  %s2999_s10 = smov 20   ;;  %vm1453_vm15 = vcmask 162944  }
  0x7f   : > { %2470 = vmatprep.subr.mxu0 %v2977_v0  ;;  %s3000_s21 = smov 24   ;;  %s3001_s28 = smov 28  }
  0x80   : > { %2471 = vmatpush3.msra.mxu0 %v402_v4  ;;  %s2419_s1 = sshll.u32 %s2960_s24, 7  ;;  %s396_s25 = scalar_lea.vmem [#allocation15], %s3206_s13 }
  0x81   : > { %2473 = vmatmul.mubr.msk.f32.vlgmr.msra.gmra.mxu0 %vm406_vm0, %v401_v5  ;;  %2495 = vmatprep.subr.mxu0 %v2977_v0  ;;  %v3308_v33 = vld [vmem:[#allocation3] sm:$0xff]  ;;  %v2990_v5 = vmov 3   ;;  %s2225_s7 = sshll.u32 %s396_s25, 4  ;;  %p3673_p9 = scmp.ne.s32.totalorder %s3659_s18, 0  ;;  %s2226_s7 = int_to_ptr.vmem [resolvable:$true] %s2225_s7 }
  0x82   : > { %2497 = vmatprep.mubr.msk.f32.mxu0 %vm2978_vm1, %v2977_v0  ;;  %s3002_s24 = smov [#allocation15]  }
  0x83   : > { %s2884_s13 = sshll.u32 %s3002_s24, 4  ;;  %s2885_s13 = int_to_ptr.vmem [resolvable:$false] %s2884_s13 }
  0x84   : > { %p2887_p10 = scmp.lt.s32.totalorder %s2226_s7, %s2885_s13 }
  0xec   : > { %v3270_v11 = vpop.permute.xlu1 %678 }
 0x141   : > { %v476_v7 = vpop.f32.mrf.mxu0 }
 0x142   : > { %v480_v8 = vmul.f32 0.5, %v476_v7 }
 0x143   : > { %v2474_v9 = vpop.f32.mrf.mxu0 }
 0x144   : > { %481 = vst.msk [vmem:[#allocation2] sm:$0xff] %vm406_vm0, %v480_v8 }
 0x14b   : > { %v674_v10 = vld [vmem:[#allocation2] sm:$0xff] }
 0x14c   : > { %676 = vrot.lane.b32.xlu1 %v674_v10, %s2979_s27  ;;  %2478 = vmatmul.mubr.msk.f32.vlgmr.msra.gmra.mxu1 %vm489_vm2, %v674_v10 }
 0x14d   : > { %2482 = vmatprep.mubr.msk.f32.mxu1 %vm2978_vm1, %v2977_v0  ;;  %2481 = vmatpush3.msra.mxu1 %v3322_v39 }
 0x14e   : > { %2485 = vmatprep.subr.mxu1 %v2977_v0 }
 0x150   : > { %874 = vrot.lane.b32.xlu1 %v3240_v6, %s2980_s29 }
 0x154   : > { %872 = vrot.lane.b32.xlu1 %v674_v10, %s2980_s29 }
 0x158   : > { %1069 = vrot.lane.b32.xlu1 %v3240_v6, %s2981_s9 }
 0x15c   : > { %1067 = vrot.lane.b32.xlu1 %v674_v10, %s2981_s9 }
 0x160   : > { %1264 = vrot.lane.b32.xlu1 %v3240_v6, %s2982_s11 }
 0x164   : > { %1262 = vrot.lane.b32.xlu1 %v674_v10, %s2982_s11 }
 0x168   : > { %1459 = vrot.lane.b32.xlu1 %v3240_v6, %s2983_s26 }
 0x16c   : > { %1457 = vrot.lane.b32.xlu1 %v674_v10, %s2983_s26 }
 0x170   : > { %1654 = vrot.lane.b32.xlu1 %v3240_v6, %s2984_s14 }
 0x174   : > { %1652 = vrot.lane.b32.xlu1 %v674_v10, %s2984_s14 }
 0x178   : > { %1847 = vrot.lane.b32.xlu1 %v674_v10, %s2985_s30  ;;  %v2991_v10 = vmov 7  }
 0x1be   : > { %v3272_v12 = vpop.permute.xlu1 %676 }
 0x1c2   : > { %v875_v13 = vpop.permute.xlu1 %874 }
 0x1c3   : > { %2496 = vmatpush3.xpose.msk.msra.mxu0 %vm489_vm2, %v875_v13 }
 0x1c4   : > { %2505 = vmatprep.subr.mxu0 %v2977_v0 }
 0x1c6   : > { %v873_v14 = vpop.permute.xlu1 %872 }
 0x1c7   : > { %2498 = vmatmul.mubr.msk.f32.vlgmr.msra.gmra.mxu0 %vm489_vm2, %v873_v14 }
 0x1c8   : > { %2507 = vmatprep.mubr.msk.f32.mxu0 %vm2978_vm1, %v2977_v0 }
 0x1ca   : > { %v1070_v15 = vpop.permute.xlu1 %1069 }
 0x1cb   : > { %2506 = vmatpush3.xpose.msk.msra.mxu0 %vm489_vm2, %v1070_v15  ;;  %v2992_v15 = vmov 4  }
 0x1cc   : > { %2515 = vmatprep.subr.mxu0 %v2977_v0 }
 0x1ce   : > { %v1068_v16 = vpop.permute.xlu1 %1067 }
 0x1cf   : > { %2508 = vmatmul.mubr.msk.f32.vlgmr.msra.gmra.mxu0 %vm489_vm2, %v1068_v16 }
 0x1d0   : > { %2517 = vmatprep.mubr.msk.f32.mxu0 %vm2978_vm1, %v2977_v0 }
 0x1d2   : > { %v1265_v17 = vpop.permute.xlu1 %1264 }
 0x1d3   : > { %2516 = vmatpush3.xpose.msk.msra.mxu0 %vm489_vm2, %v1265_v17 }
 0x1d4   : > { %2525 = vmatprep.subr.mxu0 %v2977_v0 }
 0x1d6   : > { %v1263_v18 = vpop.permute.xlu1 %1262 }
 0x1d7   : > { %2518 = vmatmul.mubr.msk.f32.vlgmr.msra.gmra.mxu0 %vm489_vm2, %v1263_v18 }
 0x1d8   : > { %2527 = vmatprep.mubr.msk.f32.mxu0 %vm2978_vm1, %v2977_v0 }
 0x1da   : > { %v1460_v19 = vpop.permute.xlu1 %1459 }
 0x1db   : > { %2526 = vmatpush3.xpose.msk.msra.mxu0 %vm489_vm2, %v1460_v19 }
 0x1dc   : > { %2535 = vmatprep.subr.mxu0 %v2977_v0 }
 0x1de   : > { %v1458_v20 = vpop.permute.xlu1 %1457 }
 0x1df   : > { %2528 = vmatmul.mubr.msk.f32.vlgmr.msra.gmra.mxu0 %vm489_vm2, %v1458_v20  ;;  %v2993_v20 = vmov 5  }
 0x1e0   : > { %2537 = vmatprep.mubr.msk.f32.mxu0 %vm2978_vm1, %v2977_v0 }
 0x1e2   : > { %v1655_v21 = vpop.permute.xlu1 %1654 }
 0x1e3   : > { %2536 = vmatpush3.xpose.msk.msra.mxu0 %vm489_vm2, %v1655_v21 }
 0x1e4   : > { %2545 = vmatprep.subr.mxu0 %v2977_v0 }
 0x1e6   : > { %v1653_v22 = vpop.permute.xlu1 %1652 }
 0x1e7   : > { %2538 = vmatmul.mubr.msk.f32.vlgmr.msra.gmra.mxu0 %vm489_vm2, %v1653_v22 }
 0x1e8   : > { %2547 = vmatprep.mubr.msk.f32.mxu0 %vm2978_vm1, %v2977_v0 }
 0x1ea   : > { %v1848_v49 = vpop.permute.xlu1 %1847 }
 0x20c   : > { %v562_v23 = vpop.f32.mrf.mxu1 }
 0x20d   : > { %v568_v24 = vsel %vm482_vm3, %v562_v23, -inf }
 0x20e   : > { %569 = vmax.xlane.f32.xlu0 %v568_v24  ;;  %v2479_v25 = vpop.f32.mrf.mxu1 }
 0x20f   : > { %v2994_v25 = vmov 6  }
 0x287   : > { %v3302_v28 = vpop.f32.mrf.mxu0 }
 0x288   : > { %v951_v29 = vsel %vm482_vm3, %v3302_v28, -inf }
 0x289   : > { %952 = vmax.xlane.f32.xlu1 %v951_v29  ;;  %v2499_v30 = vpop.f32.mrf.mxu0 }
 0x28f   : > { %v3306_v31 = vpop.f32.mrf.mxu0 }
 0x290   : > { %v1146_v58 = vsel %vm482_vm3, %v3306_v31, -inf }
 0x291   : > { %v2509_v32 = vpop.f32.mrf.mxu0 }
 0x297   : > { %v570_v34 = vpop.xlane.xlu0 %569  ;;  %v3310_v35 = vpop.f32.mrf.mxu0 }
 0x298   : > { %v3313_v36 = vmax.f32 %v3308_v33, %v570_v34  ;;  %v1341_v59 = vsel %vm482_vm3, %v3310_v35, -inf }
 0x299   : > { %v2519_v37 = vpop.f32.mrf.mxu0 }
 0x29a   : > { %v572_v38 = vsub.f32 %v3308_v33, %v3313_v36  ;;  %591 = vst.msk [vmem:[#allocation3] sm:$0xff] %vm589_vm4, %v3313_v36  ;;  %577 = vperm.xlu0 %2686, %v3313_v36  }
 0x29e   : > { %1849 = vrot.lane.b32.xlu0 %v3240_v6, %s2985_s30 }
 0x29f   : > { %v3327_v40 = vpop.f32.mrf.mxu0  ;;  %2688 = vset.pattern.permute.xlu0 %v2989_v63 }
 0x2a0   : > { %v1536_v41 = vsel %vm482_vm3, %v3327_v40, -inf }
 0x2a1   : > { %1537 = vmax.xlane.f32.xlu1 %v1536_v41  ;;  %v2529_v42 = vpop.f32.mrf.mxu0  ;;  %v3370_v1 = vld [vmem:[#allocation3] sm:$0xff] }
 0x2a7   : > { %v3332_v43 = vpop.f32.mrf.mxu0 }
 0x2a8   : > { %v1731_v60 = vsel %vm482_vm3, %v3332_v43, -inf }
 0x2a9   : > { %v2539_v44 = vpop.f32.mrf.mxu0 }
 0x312   : > { %v953_v6 = vpop.xlane.xlu1 %952 }
 0x315   : > { %v578_v45 = vpop.permute.xlu0 %577 }
 0x316   : > { %v580_v46 = vsub.f32 %v562_v23, %v578_v45 }
 0x318   : > { %v581_v47 = vmul.f32 1.442695, %v580_v46 }
 0x319   : > { %v1850_v48 = vpop.permute.xlu0 %1849 }
 0x31a   : > { %2710 = vpow2.f32 %v581_v47  ;;  %2546 = vmatpush3.xpose.msk.msra.mxu0 %vm489_vm2, %v1850_v48 }
 0x31b   : > { %2555 = vmatprep.subr.mxu0 %v2977_v0 }
 0x31d   : > { %2548 = vmatmul.mubr.msk.f32.vlgmr.msra.gmra.mxu0 %vm489_vm2, %v1848_v49 }
 0x31e   : > { %2563 = vmatprep.mubr.msk.f32.mxu0 %vm2978_vm1, %v2977_v0 }
 0x327   : > { %v3339_v50 = vpop.eup %2710 }
 0x328   : > { %2483 = vmatmul.mubr.msk.f32.vlgmr.msra.gmra.mxu1 %vm482_vm3, %v3339_v50  ;;  %v585_v44 = vsel %vm482_vm3, %v3339_v50, 0.0 }
 0x329   : > { %2486 = vmatpush3.xpose.msk.msra.mxu1 %vm489_vm2, %v3270_v11  ;;  %2487 = vmatprep.mubr.msk.f32.mxu1 %vm2978_vm1, %v2977_v0 }
 0x32a   : > { %2490 = vmatprep.subr.mxu1 %v2977_v0  ;;  %v1538_v21 = vpop.xlane.xlu1 %1537 }
 0x32c   : > { %2488 = vmatmul.mubr.msk.f32.vlgmr.msra.gmra.mxu1 %vm489_vm2, %v3272_v12 }
 0x32d   : > { %2492 = vmatprep.mubr.msk.f32.mxu1 %vm2978_vm1, %v2977_v0 }
 0x3dd   : > { %v3352_v51 = vpop.f32.mrf.mxu0 }
 0x3de   : > { %v1926_v62 = vsel %vm482_vm3, %v3352_v51, -inf }
 0x3df   : > { %v2549_v52 = vpop.f32.mrf.mxu0 }
 0x3e8   : > { %v3354_v53 = vpop.f32.mrf.mxu1 }
 0x3ea   : > { %v2484_v54 = vpop.f32.mrf.mxu1 }
 0x3ec   : > { %v3356_v55 = vpop.f32.mrf.mxu1 }
 0x3ed   : > { %v755_v56 = vsel %vm482_vm3, %v3356_v55, -inf }
 0x3ee   : > { %756 = vmax.xlane.f32.xlu0 %v755_v56  ;;  %v2489_v57 = vpop.f32.mrf.mxu1 }
 0x3f2   : > { %1147 = vmax.xlane.f32.xlu0 %v1146_v58 }
 0x3f6   : > { %1342 = vmax.xlane.f32.xlu0 %v1341_v59 }
 0x3fa   : > { %1732 = vmax.xlane.f32.xlu0 %v1731_v60 }
 0x3fe   : > { %1927 = vmax.xlane.f32.xlu0 %v1926_v62 }
 0x477   : > { %v757_v2 = vpop.xlane.xlu0 %756 }
 0x478   : > { %v3373_v3 = vmax.f32 %v3370_v1, %v757_v2 }
 0x47a   : > { %v759_v4 = vsub.f32 %v3370_v1, %v3373_v3  ;;  %778 = vst.msk [vmem:[#allocation3] sm:$0xff] %vm776_vm5, %v3373_v3  ;;  %764 = vperm.xlu1 %2687, %v3373_v3  }
 0x47b   : > { %v1148_v12 = vpop.xlane.xlu0 %1147 }
 0x47e   : > { %787 = vrot.lane.b32.xlu1 %v3322_v39, %s2979_s27 }
 0x47f   : > { %2689 = vset.pattern.permute.xlu1 %v2990_v5  ;;  %v1343_v17 = vpop.xlane.xlu0 %1342 }
 0x481   : > { %v3383_v7 = vld [vmem:[#allocation3] sm:$0xff] }
 0x482   : > { %v3386_v8 = vmax.f32 %v3383_v7, %v953_v6 }
 0x483   : > { %v1733_v29 = vpop.xlane.xlu0 %1732 }
 0x484   : > { %974 = vst.msk [vmem:[#allocation3] sm:$0xff] %vm972_vm6, %v3386_v8  ;;  %960 = vperm.xlu0 %2688, %v3386_v8   ;;  %v955_v9 = vsub.f32 %v3383_v7, %v3386_v8 }
 0x487   : > { %v1928_v37 = vpop.xlane.xlu0 %1927 }
 0x488   : > { %2693 = vset.pattern.permute.xlu0 %v2991_v10 }
 0x48b   : > { %v3394_v11 = vld [vmem:[#allocation3] sm:$0xff] }
 0x48c   : > { %v3397_v13 = vmax.f32 %v3394_v11, %v1148_v12 }
 0x48e   : > { %v1150_v14 = vsub.f32 %v3394_v11, %v3397_v13  ;;  %1169 = vst.msk [vmem:[#allocation3] sm:$0xff] %vm1167_vm7, %v3397_v13  ;;  %1155 = vperm.xlu1 %2689, %v3397_v13  }
 0x492   : > { %982 = vrot.lane.b32.xlu1 %v3322_v39, %s2980_s29  ;;  %s3581_s29 = scalar_lea.hbm %s3630_s6, %s2419_s1 }
 0x493   : > { %2690 = vset.pattern.permute.xlu1 %v2992_v15 }
 0x495   : > { %v3407_v16 = vld [vmem:[#allocation3] sm:$0xff] }
 0x496   : > { %v3410_v18 = vmax.f32 %v3407_v16, %v1343_v17 }
 0x498   : > { %v1345_v19 = vsub.f32 %v3407_v16, %v3410_v18  ;;  %1364 = vst.msk [vmem:[#allocation3] sm:$0xff] %vm1362_vm8, %v3410_v18  ;;  %1350 = vperm.xlu1 %2690, %v3410_v18  }
 0x49c   : > { %1177 = vrot.lane.b32.xlu1 %v3322_v39, %s2981_s9  ;;  %s2211_s9 = scalar_lea.sflag [#allocation8], %s3203_s19 }
 0x49d   : > { %2691 = vset.pattern.permute.xlu1 %v2993_v20 }
 0x49f   : > { %v3420_v22 = vld [vmem:[#allocation3] sm:$0xff] }
 0x4a0   : > { %v3423_v23 = vmax.f32 %v3420_v22, %v1538_v21 }
 0x4a2   : > { %1559 = vst.msk [vmem:[#allocation3] sm:$0xff] %vm1557_vm9, %v3423_v23  ;;  %1545 = vperm.xlu1 %2691, %v3423_v23   ;;  %v1540_v24 = vsub.f32 %v3420_v22, %v3423_v23 }
 0x4a6   : > { %1372 = vrot.lane.b32.xlu1 %v3322_v39, %s2982_s11  ;;  %s2880_s11 = scalar_lea.vmem %s2226_s7, 128 }
 0x4a7   : > { %2692 = vset.pattern.permute.xlu1 %v2994_v25  ;;  %p2881_p3 = scmp.ne.s32.totalorder %s2226_s7, %s2880_s11 }
 0x4a9   : > { %v3433_v26 = vld [vmem:[#allocation3] sm:$0xff]  ;;  %p2882_p0 = pnand %p2881_p3, %p3673_p9 }
 0x4aa   : > { %v3436_v30 = vmax.f32 %v3433_v26, %v1733_v29 }
 0x4ab   : > { %p2883_p7 = pneg %p2882_p0 }
 0x4ac   : > { %v1735_v32 = vsub.f32 %v3433_v26, %v3436_v30  ;;  %1754 = vst.msk [vmem:[#allocation3] sm:$0xff] %vm1752_vm10, %v3436_v30  ;;  %1740 = vperm.xlu1 %2692, %v3436_v30  }
 0x4b0   : > { %1567 = vrot.lane.b32.xlu1 %v3322_v39, %s2983_s26  ;;  %s2886_s26 = scalar_lea.vmem %s2885_s13, 256 }
 0x4b1   : > { %2695 = vset.pattern.permute.xlu1 %v2988_v61  ;;  %p2888_p13 = scmp.lt.s32.totalorder %s2886_s26, %s2880_s11 }
 0x4b3   : > { %v3446_v34 = vld [vmem:[#allocation3] sm:$0xff]  ;;  %p2889_p5 = por %p2888_p13, %p2887_p10 }
 0x4b4   : > { %v3449_v41 = vmax.f32 %v3446_v34, %v1928_v37  ;;  %1762 = vrot.lane.b32.xlu1 %v3322_v39, %s2984_s14 }
 0x4b5   : > { %p2890_p1 = pnand %p2889_p5, %p2883_p7 }
 0x4b6   : > { %v1930_v42 = vsub.f32 %v3446_v34, %v3449_v41  ;;  %1949 = vst.msk [vmem:[#allocation3] sm:$0xff] %vm1947_vm11, %v3449_v41  ;;  %1935 = vperm.xlu0 %2693, %v3449_v41  }
 0x4b8   : > { %1957 = vrot.lane.b32.xlu1 %v3322_v39, %s2985_s30 }
 0x4ba   : > { %2694 = vset.pattern.permute.xlu0 %v2987_v27 }
 0x4d5   : > { %586 = vadd.xlane.f32.xlu0 %v585_v44 }
 0x4f5   : > { %v765_v45 = vpop.permute.xlu1 %764 }
 0x4f6   : > { %v767_v46 = vsub.f32 %v3356_v55, %v765_v45 }
 0x4f8   : > { %v768_v47 = vmul.f32 1.442695, %v767_v46 }
 0x4f9   : > { %v788_v48 = vpop.permute.xlu1 %787 }
 0x4fa   : > { %2712 = vpow2.f32 %v768_v47  ;;  %2491 = vmatpush3.msra.mxu1 %v788_v48 }
 0x4fb   : > { %2500 = vmatprep.subr.mxu1 %v2977_v0 }
 0x4ff   : > { %v961_v49 = vpop.permute.xlu0 %960 }
 0x500   : > { %v963_v52 = vsub.f32 %v3302_v28, %v961_v49  ;;  %v760_v49 = vmul.f32 1.442695, %v759_v4 }
 0x502   : > { %v964_v54 = vmul.f32 1.442695, %v963_v52 }
 0x504   : > { %2714 = vpow2.f32 %v964_v54 }
 0x507   : > { %v2713_v39 = vpop.eup %2712 }
 0x508   : > { %2493 = vmatmul.mubr.msk.f32.vlgmr.msra.gmra.mxu1 %vm482_vm3, %v2713_v39  ;;  %v772_v50 = vsel %vm482_vm3, %v2713_v39, 0.0 }
 0x509   : > { %v1156_v56 = vpop.permute.xlu1 %1155  ;;  %773 = vadd.xlane.f32.xlu1 %v772_v50  ;;  %2502 = vmatprep.mubr.msk.f32.mxu1 %vm2978_vm1, %v2977_v0 }
 0x50a   : > { %v1158_v55 = vsub.f32 %v3306_v31, %v1156_v56  ;;  %v573_v31 = vmul.f32 1.442695, %v572_v38  ;;  %v956_v56 = vmul.f32 1.442695, %v955_v9 }
 0x50c   : > { %v1159_v57 = vmul.f32 1.442695, %v1158_v55  ;;  %v1931_v55 = vmul.f32 1.442695, %v1930_v42  ;;  %v1151_v42 = vmul.f32 1.442695, %v1150_v14 }
 0x50d   : > { %v983_v58 = vpop.permute.xlu1 %982 }
 0x50e   : > { %2716 = vpow2.f32 %v1159_v57  ;;  %2501 = vmatpush3.msra.mxu1 %v983_v58  ;;  %v583_v57 = vld [vmem:[#allocation4] sm:$0xff] }
 0x50f   : > { %2510 = vmatprep.subr.mxu1 %v2977_v0 }
 0x511   : > { %v2715_v28 = vpop.eup %2714 }
 0x512   : > { %2503 = vmatmul.mubr.msk.f32.vlgmr.msra.gmra.mxu1 %vm482_vm3, %v2715_v28  ;;  %v968_v59 = vsel %vm482_vm3, %v2715_v28, 0.0 }
 0x513   : > { %v1351_v60 = vpop.permute.xlu1 %1350  ;;  %969 = vadd.xlane.f32.xlu0 %v968_v59  ;;  %2512 = vmatprep.mubr.msk.f32.mxu1 %vm2978_vm1, %v2977_v0 }
 0x514   : > { %v1353_v62 = vsub.f32 %v3310_v35, %v1351_v60 }
 0x516   : > { %v1354_v2 = vmul.f32 1.442695, %v1353_v62 }
 0x517   : > { %v1178_v6 = vpop.permute.xlu1 %1177 }
 0x518   : > { %2718 = vpow2.f32 %v1354_v2  ;;  %2511 = vmatpush3.msra.mxu1 %v1178_v6 }
 0x519   : > { %2520 = vmatprep.subr.mxu1 %v2977_v0  ;;  %2720 = vpow2.f32 %v573_v31 }
 0x51b   : > { %v2717_v12 = vpop.eup %2716 }
 0x51c   : > { %2513 = vmatmul.mubr.msk.f32.vlgmr.msra.gmra.mxu1 %vm482_vm3, %v2717_v12  ;;  %v1163_v17 = vsel %vm482_vm3, %v2717_v12, 0.0 }
 0x51d   : > { %v1546_v21 = vpop.permute.xlu1 %1545  ;;  %1164 = vadd.xlane.f32.xlu1 %v1163_v17  ;;  %2522 = vmatprep.mubr.msk.f32.mxu1 %vm2978_vm1, %v2977_v0  ;;  %v592_v17 = vld [vmem:[#allocation5] sm:$0xff] }
 0x51e   : > { %v1548_v35 = vsub.f32 %v3327_v40, %v1546_v21 }
 0x520   : > { %v1549_v33 = vmul.f32 1.442695, %v1548_v35 }
 0x521   : > { %v1373_v36 = vpop.permute.xlu1 %1372 }
 0x522   : > { %2722 = vpow2.f32 %v1549_v33  ;;  %2521 = vmatpush3.msra.mxu1 %v1373_v36 }
 0x523   : > { %2530 = vmatprep.subr.mxu1 %v2977_v0 }
 0x525   : > { %v2719_v38 = vpop.eup %2718 }
 0x526   : > { %2523 = vmatmul.mubr.msk.f32.vlgmr.msra.gmra.mxu1 %vm482_vm3, %v2719_v38  ;;  %v1358_v29 = vsel %vm482_vm3, %v2719_v38, 0.0  ;;  %v2721_v44 = vpop.eup %2720 }
 0x527   : > { %1359 = vadd.xlane.f32.xlu1 %v1358_v29  ;;  %v1741_v37 = vpop.permute.xlu1 %1740  ;;  %2532 = vmatprep.mubr.msk.f32.mxu1 %vm2978_vm1, %v2977_v0  ;;  %v584_v28 = vmul.f32 %v2721_v44, %v583_v57  ;;  %v1541_v29 = vmul.f32 1.442695, %v1540_v24 }
 0x528   : > { %v1743_v45 = vsub.f32 %v3332_v43, %v1741_v37 }
 0x529   : > { %595 = vperm.xlu0 %2694, %v2721_v44  }
 0x52a   : > { %v1744_v40 = vmul.f32 1.442695, %v1743_v45 }
 0x52b   : > { %v1568_v46 = vpop.permute.xlu1 %1567 }
 0x52c   : > { %2724 = vpow2.f32 %v1744_v40  ;;  %2531 = vmatpush3.msra.mxu1 %v1568_v46 }
 0x52d   : > { %2540 = vmatprep.subr.mxu1 %v2977_v0  ;;  %2696 = vset.pattern.permute.xlu0 %v2989_v63  ;;  %2726 = vpow2.f32 %v760_v49  ;;  %v1736_v49 = vmul.f32 1.442695, %v1735_v32 }
 0x52f   : > { %v2723_v47 = vpop.eup %2722  ;;  %v1763_v48 = vpop.permute.xlu1 %1762 }
 0x530   : > { %2533 = vmatmul.mubr.msk.f32.vlgmr.msra.gmra.mxu1 %vm482_vm3, %v2723_v47  ;;  %v1553_v52 = vsel %vm482_vm3, %v2723_v47, 0.0 }
 0x531   : > { %1554 = vadd.xlane.f32.xlu1 %v1553_v52  ;;  %v1936_v43 = vpop.permute.xlu0 %1935  ;;  %2541 = vmatpush3.msra.mxu1 %v1763_v48 }
 0x532   : > { %v1938_v54 = vsub.f32 %v3352_v51, %v1936_v43  ;;  %2542 = vmatprep.mubr.msk.f32.mxu1 %vm2978_vm1, %v2977_v0  ;;  %2550 = vmatprep.subr.mxu1 %v2977_v0 }
 0x533   : > { %v1958_v50 = vpop.permute.xlu1 %1957 }
 0x534   : > { %v1939_v39 = vmul.f32 1.442695, %v1938_v54 }
 0x536   : > { %2728 = vpow2.f32 %v1939_v39 }
 0x537   : > { %2730 = vpow2.f32 %v956_v56 }
 0x538   : > { %2732 = vpow2.f32 %v1931_v55 }
 0x539   : > { %v2725_v1 = vpop.eup %2724  ;;  %2734 = vpow2.f32 %v1151_v42 }
 0x53a   : > { %2543 = vmatmul.mubr.msk.f32.vlgmr.msra.gmra.mxu1 %vm482_vm3, %v2725_v1  ;;  %v2727_v3 = vpop.eup %2726  ;;  %v1748_v7 = vsel %vm482_vm3, %v2725_v1, 0.0 }
 0x53b   : > { %2551 = vmatpush3.msra.mxu1 %v1958_v50  ;;  %2552 = vmatprep.mubr.msk.f32.mxu1 %vm2978_vm1, %v2977_v0  ;;  %vm1648_vm1 = vcmask 195744  }
 0x542   : > { %782 = vperm.xlu1 %2695, %v2727_v3  }
 0x543   : > { %v2729_v4 = vpop.eup %2728 }
 0x544   : > { %2553 = vmatmul.mubr.msk.f32.vlgmr.msra.gmra.mxu1 %vm482_vm3, %v2729_v4  ;;  %v1943_v51 = vsel %vm482_vm3, %v2729_v4, 0.0  ;;  %v2731_v58 = vpop.eup %2730  ;;  %vm1843_vm3 = vcmask 228544  }
 0x545   : > { %v3516_v62 = vpop.eup %2732 }
 0x546   : > { %2697 = vset.pattern.permute.xlu1 %v2990_v5  ;;  %v2735_v36 = vpop.eup %2734 }
 0x548   : > { %1944 = vadd.xlane.f32.xlu0 %v1943_v51 }
 0x55e   : > { %978 = vperm.xlu0 %2696, %v2731_v58   ;;  %v587_v59 = vpop.xlane.xlu0 %586 }
 0x55f   : > { %v588_v60 = vadd.f32 %v587_v59, %v584_v28 }
 0x561   : > { %590 = vst.msk [vmem:[#allocation4] sm:$0xff] %vm589_vm4, %v588_v60  ;;  %vm2038_vm4 = vcmask 261344  }
 0x562   : > { %2701 = vset.pattern.permute.xlu0 %v2991_v10 }
 0x563   : > { %1953 = vperm.xlu0 %2701, %v3516_v62  }
 0x566   : > { %1749 = vadd.xlane.f32.xlu1 %v1748_v7 }
 0x567   : > { %2703 = vset.pattern.permute.xlu0 %v2988_v61  ;;  %v1346_v61 = vmul.f32 1.442695, %v1345_v19 }
 0x568   : > { %v770_v8 = vld [vmem:[#allocation4] sm:$0xff] }
 0x569   : > { %v771_v9 = vmul.f32 %v2727_v3, %v770_v8  ;;  %2736 = vpow2.f32 %v1346_v61  ;;  %v2125_v61 = vld [vmem:[#allocation14 + $0x8] sm:$0xff] }
 0x56a   : > { %2738 = vpow2.f32 %v1541_v29 }
 0x56b   : > { %2740 = vpow2.f32 %v1736_v49 }
 0x576   : > { %v2737_v16 = vpop.eup %2736 }
 0x592   : > { %v774_v34 = vpop.xlane.xlu1 %773 }
 0x593   : > { %v775_v41 = vadd.f32 %v774_v34, %v771_v9 }
 0x595   : > { %777 = vst.msk [vmem:[#allocation4] sm:$0xff] %vm776_vm5, %v775_v41 }
 0x59c   : > { %v966_v2 = vld [vmem:[#allocation4] sm:$0xff]  ;;  %v970_v6 = vpop.xlane.xlu0 %969 }
 0x59d   : > { %v967_v31 = vmul.f32 %v2731_v58, %v966_v2 }
 0x59f   : > { %v971_v12 = vadd.f32 %v970_v6, %v967_v31 }
 0x5a1   : > { %973 = vst.msk [vmem:[#allocation4] sm:$0xff] %vm972_vm6, %v971_v12  ;;  %v2127_v12 = vld [vmem:[#allocation14 + $0x18] sm:$0xff] }
 0x5a2   : > { %2556 = vmatpush3.msra.mxu0 %v2127_v12 }
 0x5a3   : > { %2557 = vmatprep.subr.mxu0 %v2977_v0 }
 0x5a4   : > { %v596_v21 = vpop.permute.xlu0 %595 }
 0x5a5   : > { %v598_v35 = vmul.f32 %v596_v21, %v592_v17  ;;  %v2126_v17 = vld [vmem:[#allocation14 + $0x10] sm:$0xff] }
 0x5a6   : > { %v1165_v14 = vpop.xlane.xlu1 %1164  ;;  %2558 = vmatpush3.msra.mxu0 %v2126_v17 }
 0x5a7   : > { %v672_v33 = vadd.f32 %v3354_v53, %v598_v35  ;;  %v2739_v53 = vpop.eup %2738  ;;  %2559 = vmatprep.subr.mxu0 %v2977_v0  ;;  %v2124_v35 = vld [vmem:[#allocation14] sm:$0xff] }
 0x5a8   : > { %v1161_v11 = vld [vmem:[#allocation4] sm:$0xff]  ;;  %v2741_v3 = vpop.eup %2740  ;;  %2560 = vmatpush3.msra.mxu0 %v2125_v61 }
 0x5a9   : > { %673 = vst.msk [vmem:[#allocation5] sm:$0xff] %vm489_vm2, %v672_v33  ;;  %v1162_v13 = vmul.f32 %v2735_v36, %v1161_v11  ;;  %2561 = vmatprep.subr.mxu0 %v2977_v0 }
 0x5aa   : > { %2562 = vmatpush3.msra.mxu0 %v2124_v35 }
 0x5ab   : > { %v1166_v38 = vadd.f32 %v1165_v14, %v1162_v13 }
 0x5ad   : > { %1168 = vst.msk [vmem:[#allocation4] sm:$0xff] %vm1167_vm7, %v1166_v38 }
 0x5b0   : > { %v1360_v37 = vpop.xlane.xlu1 %1359 }
 0x5b4   : > { %v1356_v18 = vld [vmem:[#allocation4] sm:$0xff] }
 0x5b5   : > { %v1357_v19 = vmul.f32 %v2737_v16, %v1356_v18 }
 0x5b7   : > { %v1361_v44 = vadd.f32 %v1360_v37, %v1357_v19 }
 0x5b9   : > { %1363 = vst.msk [vmem:[#allocation4] sm:$0xff] %vm1362_vm8, %v1361_v44 }
 0x5ba   : > { %v1555_v46 = vpop.xlane.xlu1 %1554 }
 0x5be   : > { %v783_v50 = vpop.permute.xlu1 %782 }
 0x5c0   : > { %v1551_v45 = vld [vmem:[#allocation4] sm:$0xff] }
 0x5c1   : > { %v1552_v40 = vmul.f32 %v2739_v53, %v1551_v45 }
 0x5c3   : > { %v1556_v47 = vadd.f32 %v1555_v46, %v1552_v40 }
 0x5c5   : > { %1558 = vst.msk [vmem:[#allocation4] sm:$0xff] %vm1557_vm9, %v1556_v47 }
 0x5c8   : > { %v859_v48 = vpop.f32.mrf.mxu1 }
 0x5c9   : > { %864 = vrot.lane.b32.xlu1 %v859_v48, %s2995_s15 }
 0x5ca   : > { %v2494_v22 = vpop.f32.mrf.mxu1 }
 0x5cc   : > { %v1746_v1 = vld [vmem:[#allocation4] sm:$0xff] }
 0x5cd   : > { %v1747_v4 = vmul.f32 %v2741_v3, %v1746_v1 }
 0x5d1   : > { %v1945_v58 = vpop.xlane.xlu0 %1944 }
 0x5d2   : > { %v1054_v23 = vpop.f32.mrf.mxu1 }
 0x5d3   : > { %1059 = vrot.lane.b32.xlu1 %v1054_v23, %s2996_s20 }
 0x5d4   : > { %v2504_v24 = vpop.f32.mrf.mxu1 }
 0x5d7   : > { %1173 = vperm.xlu1 %2697, %v2735_v36  }
 0x5db   : > { %2698 = vset.pattern.permute.xlu1 %v2992_v15 }
 0x5dc   : > { %v1249_v52 = vpop.f32.mrf.mxu1 }
 0x5dd   : > { %1254 = vrot.lane.b32.xlu1 %v1249_v52, %s2997_s16 }
 0x5de   : > { %v2514_v43 = vpop.f32.mrf.mxu1 }
 0x5e1   : > { %1368 = vperm.xlu1 %2698, %v2737_v16  }
 0x5e5   : > { %2699 = vset.pattern.permute.xlu1 %v2993_v20 }
 0x5e6   : > { %v1444_v54 = vpop.f32.mrf.mxu1 }
 0x5e7   : > { %1449 = vrot.lane.b32.xlu1 %v1444_v54, %s2998_s17 }
 0x5e8   : > { %v2524_v39 = vpop.f32.mrf.mxu1 }
 0x5eb   : > { %1563 = vperm.xlu1 %2699, %v2739_v53  }
 0x5ef   : > { %v1750_v51 = vpop.xlane.xlu1 %1749  ;;  %2700 = vset.pattern.permute.xlu1 %v2994_v25 }
 0x5f0   : > { %v1751_v26 = vadd.f32 %v1750_v51, %v1747_v4  ;;  %v1639_v30 = vpop.f32.mrf.mxu1 }
 0x5f1   : > { %1644 = vrot.lane.b32.xlu1 %v1639_v30, %s2999_s10 }
 0x5f2   : > { %1753 = vst.msk [vmem:[#allocation4] sm:$0xff] %vm1752_vm10, %v1751_v26  ;;  %v2534_v32 = vpop.f32.mrf.mxu1 }
 0x5f5   : > { %1758 = vperm.xlu1 %2700, %v2741_v3  }
 0x5f9   : > { %v1941_v56 = vld [vmem:[#allocation4] sm:$0xff]  ;;  %2702 = vset.pattern.permute.xlu1 %v2987_v27  ;;  %v779_v27 = vld [vmem:[#allocation5] sm:$0xff] }
 0x5fa   : > { %v1942_v55 = vmul.f32 %v3516_v62, %v1941_v56  ;;  %v1834_v57 = vpop.f32.mrf.mxu1  ;;  %v785_v62 = vmul.f32 %v783_v50, %v779_v27 }
 0x5fb   : > { %1839 = vrot.lane.b32.xlu1 %v1834_v57, %s3000_s21 }
 0x5fc   : > { %v1946_v28 = vadd.f32 %v1945_v58, %v1942_v55  ;;  %v2544_v59 = vpop.f32.mrf.mxu1 }
 0x5fe   : > { %1948 = vst.msk [vmem:[#allocation4] sm:$0xff] %vm1947_vm11, %v1946_v28 }
 0x604   : > { %v2029_v60 = vpop.f32.mrf.mxu1 }
 0x605   : > { %2034 = vrot.lane.b32.xlu1 %v2029_v60, %s3001_s28  ;;  %v2053_v7 = vld [vmem:[#allocation4] sm:$0xff] }
 0x606   : > { %v2554_v8 = vpop.f32.mrf.mxu1  ;;  %2742 = vrcp.f32 %v2053_v7 }
 0x613   : > { %v2743_v9 = vpop.eup %2742 }
 0x614   : > { %2058 = vperm.xlu0 %2703, %v2743_v9   ;;  %2048 = vperm.xlu1 %2702, %v2743_v9  }
 0x618   : > { %2706 = vset.pattern.permute.xlu0 %v2992_v15  ;;  %2704 = vset.pattern.permute.xlu1 %v2989_v63  ;;  %v979_v63 = vpop.permute.xlu0 %978 }
 0x619   : > { %2088 = vperm.xlu0 %2706, %v2743_v9   ;;  %2068 = vperm.xlu1 %2704, %v2743_v9  }
 0x61c   : > { %v1954_v45 = vpop.permute.xlu0 %1953 }
 0x61d   : > { %2709 = vset.pattern.permute.xlu0 %v2991_v10  ;;  %2705 = vset.pattern.permute.xlu1 %v2990_v5 }
 0x61e   : > { %2118 = vperm.xlu0 %2709, %v2743_v9   ;;  %2078 = vperm.xlu1 %2705, %v2743_v9  }
 0x622   : > { %2707 = vset.pattern.permute.xlu1 %v2993_v20 }
 0x623   : > { %2098 = vperm.xlu1 %2707, %v2743_v9  }
 0x627   : > { %2708 = vset.pattern.permute.xlu1 %v2994_v25 }
 0x628   : > { %2108 = vperm.xlu1 %2708, %v2743_v9   ;;  %v2416_v9 = vld [vmem:[%s3629_s5] ss:$0 sm:$0xff] }
 0x63b   : > { %v865_v15 = vpop.permute.xlu1 %864 }
 0x63c   : > { %v867_v34 = vadd.f32 %v865_v15, %v785_v62 }
 0x63e   : > { %869 = vst.msk [vmem:[#allocation5] sm:$0xff] %vm868_vm12, %v867_v34 }
 0x645   : > { %v975_v41 = vld [vmem:[#allocation5] sm:$0xff]  ;;  %v1060_v5 = vpop.permute.xlu1 %1059 }
 0x646   : > { %v981_v10 = vmul.f32 %v979_v63, %v975_v41 }
 0x648   : > { %v1062_v42 = vadd.f32 %v1060_v5, %v981_v10 }
 0x64a   : > { %1064 = vst.msk [vmem:[#allocation5] sm:$0xff] %vm1063_vm13, %v1062_v42 }
 0x651   : > { %v1170_v2 = vld [vmem:[#allocation5] sm:$0xff] }
 0x652   : > { %v1174_v20 = vpop.permute.xlu1 %1173 }
 0x653   : > { %v1176_v31 = vmul.f32 %v1174_v20, %v1170_v2 }
 0x656   : > { %v1255_v25 = vpop.permute.xlu1 %1254 }
 0x657   : > { %v1257_v6 = vadd.f32 %v1255_v25, %v1176_v31 }
 0x659   : > { %1259 = vst.msk [vmem:[#allocation5] sm:$0xff] %vm1258_vm14, %v1257_v6 }
 0x65c   : > { %v1369_v21 = vpop.permute.xlu1 %1368 }
 0x660   : > { %v1365_v33 = vld [vmem:[#allocation5] sm:$0xff]  ;;  %v1450_v11 = vpop.permute.xlu1 %1449 }
 0x661   : > { %v1371_v36 = vmul.f32 %v1369_v21, %v1365_v33 }
 0x663   : > { %v1452_v13 = vadd.f32 %v1450_v11, %v1371_v36 }
 0x665   : > { %1454 = vst.msk [vmem:[#allocation5] sm:$0xff] %vm1453_vm15, %v1452_v13 }
 0x666   : > { %v1564_v14 = vpop.permute.xlu1 %1563 }
 0x66a   : > { %v1645_v16 = vpop.permute.xlu1 %1644 }
 0x66c   : > { %v1560_v38 = vld [vmem:[#allocation5] sm:$0xff] }
 0x66d   : > { %v1566_v29 = vmul.f32 %v1564_v14, %v1560_v38 }
 0x66f   : > { %v1647_v18 = vadd.f32 %v1645_v16, %v1566_v29 }
 0x670   : > { %v1759_v19 = vpop.permute.xlu1 %1758 }
 0x671   : > { %1649 = vst.msk [vmem:[#allocation5] sm:$0xff] %vm1648_vm1, %v1647_v18 }
 0x674   : > { %v1840_v0 = vpop.permute.xlu1 %1839 }
 0x678   : > { %v1755_v37 = vld [vmem:[#allocation5] sm:$0xff]  ;;  %v2035_v47 = vpop.permute.xlu1 %2034 }
 0x679   : > { %v1761_v44 = vmul.f32 %v1759_v19, %v1755_v37 }
 0x67b   : > { %v1842_v53 = vadd.f32 %v1840_v0, %v1761_v44 }
 0x67d   : > { %1844 = vst.msk [vmem:[#allocation5] sm:$0xff] %vm1843_vm3, %v1842_v53 }
 0x684   : > { %v1950_v40 = vld [vmem:[#allocation5] sm:$0xff] }
 0x685   : > { %v1956_v46 = vmul.f32 %v1954_v45, %v1950_v40 }
 0x687   : > { %v2037_v48 = vadd.f32 %v2035_v47, %v1956_v46 }
 0x689   : > { %2039 = vst.msk [vmem:[#allocation5] sm:$0xff] %vm2038_vm4, %v2037_v48 }
 0x68f   : > { %v2049_v22 = vpop.permute.xlu1 %2048  ;;  %v2059_v52 = vpop.permute.xlu0 %2058 }
 0x690   : > { %v2045_v23 = vld [vmem:[#allocation5] sm:$0xff] }
 0x691   : > { %v2051_v24 = vmul.f32 %v2049_v22, %v2045_v23 }
 0x693   : > { %2052 = vst.msk [vmem:[#allocation5] sm:$0xff] %vm489_vm2, %v2051_v24 }
 0x694   : > { %v2069_v54 = vpop.permute.xlu1 %2068  ;;  %v2089_v51 = vpop.permute.xlu0 %2088 }
 0x699   : > { %v2079_v1 = vpop.permute.xlu1 %2078  ;;  %v2119_v59 = vpop.permute.xlu0 %2118 }
 0x69a   : > { %v2055_v49 = vld [vmem:[#allocation5] sm:$0xff] }
 0x69b   : > { %v2061_v43 = vmul.f32 %v2059_v52, %v2055_v49 }
 0x69d   : > { %2062 = vst.msk [vmem:[#allocation5] sm:$0xff] %vm868_vm12, %v2061_v43 }
 0x69e   : > { %v2099_v32 = vpop.permute.xlu1 %2098 }
 0x6a3   : > { %v2109_v57 = vpop.permute.xlu1 %2108 }
 0x6a4   : > { %v2065_v39 = vld [vmem:[#allocation5] sm:$0xff] }
 0x6a5   : > { %v2071_v50 = vmul.f32 %v2069_v54, %v2065_v39 }
 0x6a7   : > { %2072 = vst.msk [vmem:[#allocation5] sm:$0xff] %vm1063_vm13, %v2071_v50 }
 0x6ae   : > { %v2075_v3 = vld [vmem:[#allocation5] sm:$0xff] }
 0x6af   : > { %v2081_v4 = vmul.f32 %v2079_v1, %v2075_v3 }
 0x6b1   : > { %2082 = vst.msk [vmem:[#allocation5] sm:$0xff] %vm1258_vm14, %v2081_v4 }
 0x6b8   : > { %v2085_v26 = vld [vmem:[#allocation5] sm:$0xff] }
 0x6b9   : > { %v2091_v30 = vmul.f32 %v2089_v51, %v2085_v26 }
 0x6bb   : > { %2092 = vst.msk [vmem:[#allocation5] sm:$0xff] %vm1453_vm15, %v2091_v30 }
 0x6c2   : > { %v2095_v56 = vld [vmem:[#allocation5] sm:$0xff] }
 0x6c3   : > { %v2101_v55 = vmul.f32 %v2099_v32, %v2095_v56 }
 0x6c5   : > { %2102 = vst.msk [vmem:[#allocation5] sm:$0xff] %vm1648_vm1, %v2101_v55 }
 0x6cc   : > { %v2105_v58 = vld [vmem:[#allocation5] sm:$0xff] }
 0x6cd   : > { %v2111_v28 = vmul.f32 %v2109_v57, %v2105_v58 }
 0x6cf   : > { %2112 = vst.msk [vmem:[#allocation5] sm:$0xff] %vm1843_vm3, %v2111_v28 }
 0x6d6   : > { %v2115_v60 = vld [vmem:[#allocation5] sm:$0xff] }
 0x6d7   : > { %v2121_v7 = vmul.f32 %v2119_v59, %v2115_v60 }
 0x6d9   : > { %2122 = vst.msk [vmem:[#allocation5] sm:$0xff] %vm2038_vm4, %v2121_v7 }
 0x6e0   : > { %v2123_v8 = vld [vmem:[#allocation5] sm:$0xff] }
 0x6e1   : > { %2564 = vmatmul.mubr.msk.f32.vlgmr.msra.gmra.mxu0 %vm406_vm0, %v2123_v8 }
 0x7a1   : > { %v2205_v27 = vpop.f32.mrf.mxu0 }
 0x7a2   : > { %v2206_v62 = vadd.f32 %v2416_v9, %v2205_v27 }
 0x7a3   : > { %v2565_v15 = vpop.f32.mrf.mxu0 }
 0x7a4   : > { %2209 = vst.msk [vmem:[%s396_s25] sm:$0xff] %vm406_vm0, %v2206_v62 }
 0x7a5   : > { %2893 = shalt.err (!%p2890_p1)
}
 0x7a6   : > { %s2894_s14 = scalar_lea.hbm %s3581_s29, 128  ;;  %s2898_s15 = scalar_lea.hbm %s3630_s6, 256 }
 0x7a7   : > { %p2895_p4 = scmp.ne.s32.totalorder %s3581_s29, %s2894_s14  ;;  %p2899_p11 = scmp.lt.s32.totalorder %s3581_s29, %s3630_s6 }
 0x7a8   : > { %p2900_p2 = scmp.lt.s32.totalorder %s2898_s15, %s2894_s14 }
 0x7a9   : > { %p2896_p6 = pnand %p2895_p4, %p3673_p9 }
 0x7aa   : > { %p2901_p12 = por %p2900_p2, %p2899_p11 }
 0x7ab   : > { %p2897_p8 = pneg %p2896_p6 }
 0x7ad   : > { %p2902_p3 = pnand %p2901_p12, %p2897_p8 }
 0x7af   : > { %2905 = shalt.err (!%p2902_p3)
}
 0x7b0   : > { %2580 = dma.vmem_to_hbm [thread:$0]  (%p3673_p9), %s2226_s7, 128, %s3581_s29, %s2211_s9  }
 0x7b1 PF: > { %s3674_s17 = sld [smem:[#allocation20_spill]] }
 0x7b2   : > { %s3675_s10 = sld [smem:[#allocation23_spill]] }
 0x7b3   : > { %s3676_s21 = sld [smem:[#allocation22_spill]] }
 0x7b7   : > { %s2237_s28 = sand.u32 1, %s3674_s17  }
 0x7b8   : > { %p3677_p0 = scmp.ne.s32.totalorder %s3675_s10, 0  ;;  %s2238_s12 = scalar_lea.sflag [#allocation8], %s2237_s28 }
 0x7b9   : > { %p3678_p7 = scmp.ge.s32.totalorder %s3676_s21, 2 }
 0x7bb   : > { %p2600_p10 = pnand %p3678_p7, %p3677_p0 }
 0x7bd   : > { %p2601_p13 = pneg %p2600_p10 }
 0x7bf   : > { %2943 = dma.done.wait (%p2601_p13), %s2238_s12, 128  }
 0x7c0   : > { %2945 = vsyncadd (%p2601_p13), %s2238_s12, 4294967168  ;;  %s26_s26 = sadd.s32 1, %s3676_s21   ;;  %s3679_s18 = sld [smem:[#allocation25_spill]] }
 0x7c1   : > { %p23_p5 = scmp.ge.s32.totalorder %s26_s26, 4   ;;  %s3680_s24 = sld [smem:[#allocation21_spill]] }
 0x7c2   : > { %s3681_s25 = sld [smem:[#allocation24_spill]]  ;;  %s3682_s21 = smov %s2952_s22 }
 0x7c3   : > { %s3683_s22 = smov %s2956_s23  ;;  %25 = sbr.rel (!%p23_p5) target bundleno = 12 (0xc), region = 129 }
 0x7c6   : > { %s3684_s23 = smov %s3679_s18 }
 0x7c8   :  { %2243 = vsyncpa [#allocation7], 1 }
 0x7c9   :  { %2245 = vsyncpa [#allocation7 + $0x1], 1 }
 0x7ca   :  { %2246 = vsyncpa [#allocation10], 1 }
 0x7cb   :  { %2248 = vsyncpa [#allocation10 + $0x1], 1 }
 0x7cc   :  { %2249 = vsyncpa [#allocation13], 1 }
 0x7cd   :  { %2250 = vsyncpa [#allocation8], 1 }
 0x7ce   :  { %2252 = vsyncpa [#allocation8 + $0x1], 1 }

</bundles_post_ra>
